<compile_context>
chip_gen: v5e
topology: v5e:2x2
jax: 0.10.0
libtpu: 0.0.40
codegen_flags: <defaults>
</compile_context>

<pallas_src>
import functools

import jax
import jax.numpy as jnp
from jax.experimental import pallas as pl
from jax.experimental.pallas import tpu as pltpu

BN_EPS = 1e-5


# -----------------------------------------------------------------------------
# Fused kernel:  y = conv2d(relu(x * scale + shift), W_band) [+ bias] [+ res]
# -----------------------------------------------------------------------------
def _fused_conv_kernel(*refs, K, pad, H, W, Cout,
                       has_affine, relu_prologue, has_bias, has_residual):
    it = iter(refs)
    x_ref = next(it)                               # (1, H, W*Cin)        bf16
    scale_ref = next(it) if has_affine else None   # (1, W*Cin)           f32
    shift_ref = next(it) if has_affine else None   # (1, W*Cin)           f32
    w_ref = next(it)                               # (K, W*Cin, Wo*Cout)  bf16
    b_ref = next(it) if has_bias else None         # (1, Wo*Cout)         f32
    r_ref = next(it) if has_residual else None     # (1, Ho, Wo*Cout)     bf16
    o_ref = next(it)                               # (1, Ho, Wo*Cout)
    xp_ref = next(it) if pad > 0 else None         # (H+2p, W*Cin)        bf16

    Ho = H + 2 * pad - K + 1
    Wo = W + 2 * pad - K + 1

    # --- fused BatchNorm(eval) affine + ReLU prologue, computed in f32 ---
    x = x_ref[0].astype(jnp.float32)               # (H, W*Cin), lane dense
    if has_affine:
        x = x * scale_ref[...] + shift_ref[...]
    if relu_prologue:
        x = jnp.maximum(x, 0.0)
    xb = x.astype(jnp.bfloat16)

    # --- H-direction zero padding in VMEM scratch (W-padding lives in w) ---
    if pad > 0:
        xp_ref[...] = jnp.zeros_like(xp_ref)
        xp_ref[pad:pad + H, :] = xb
        xp = xp_ref[...]
    else:
        xp = xb

    # --- K banded matmuls on the MXU, bf16 inputs / f32 accumulation ---
    acc = jnp.zeros((Ho, Wo * Cout), jnp.float32)
    for kh in range(K):                            # static unroll
        acc = acc + jnp.dot(xp[kh:kh + Ho, :], w_ref[kh],
                            preferred_element_type=jnp.float32)

    # --- fused epilogue: bias + residual, then one dense 128-lane store ---
    if has_bias:
        acc = acc + b_ref[...]
    if has_residual:
        acc = acc + r_ref[0].astype(jnp.float32)
    o_ref[...] = acc.astype(o_ref.dtype)[None]


# -----------------------------------------------------------------------------
# One fused WNConv2d layer (wrapper around pallas_call)
# -----------------------------------------------------------------------------
def _fused_conv_layer(x_packed, band_w, *, H, W, Cin, Cout, K, pad,
                      scale=None, shift=None, bias=None, residual=None,
                      relu_prologue=False, out_dtype=jnp.bfloat16):
    N = x_packed.shape[0]
    Ho = H + 2 * pad - K + 1
    Wo = W + 2 * pad - K + 1
    has_affine = scale is not None
    has_bias = bias is not None
    has_residual = residual is not None

    inputs = [x_packed]
    in_specs = [pl.BlockSpec((1, H, W * Cin), lambda n: (n, 0, 0))]
    if has_affine:
        # per-channel vectors tiled into the lane-packed (W*C) layout
        inputs.append(jnp.tile(scale.astype(jnp.float32), W).reshape(1, W * Cin))
        inputs.append(jnp.tile(shift.astype(jnp.float32), W).reshape(1, W * Cin))
        in_specs.append(pl.BlockSpec((1, W * Cin), lambda n: (0, 0)))
        in_specs.append(pl.BlockSpec((1, W * Cin), lambda n: (0, 0)))
    inputs.append(band_w)
    in_specs.append(pl.BlockSpec((K, W * Cin, Wo * Cout), lambda n: (0, 0, 0)))
    if has_bias:
        inputs.append(jnp.tile(bias.astype(jnp.float32), Wo).reshape(1, Wo * Cout))
        in_specs.append(pl.BlockSpec((1, Wo * Cout), lambda n: (0, 0)))
    if has_residual:
        inputs.append(residual)
        in_specs.append(pl.BlockSpec((1, Ho, Wo * Cout), lambda n: (n, 0, 0)))

    scratch_shapes = []
    if pad > 0:
        scratch_shapes.append(pltpu.VMEM((H + 2 * pad, W * Cin), jnp.bfloat16))

    kernel = functools.partial(
        _fused_conv_kernel, K=K, pad=pad, H=H, W=W, Cout=Cout,
        has_affine=has_affine, relu_prologue=relu_prologue,
        has_bias=has_bias, has_residual=has_residual)

    return pl.pallas_call(
        kernel,
        out_shape=jax.ShapeDtypeStruct((N, Ho, Wo * Cout), out_dtype),
        grid_spec=pltpu.PrefetchScalarGridSpec(
            num_scalar_prefetch=0,
            grid=(N,),  # N=2 -> exactly 2 balanced parallel blocks (v7x dual TC)
            in_specs=in_specs,
            out_specs=pl.BlockSpec((1, Ho, Wo * Cout), lambda n: (n, 0, 0)),
            scratch_shapes=scratch_shapes),
        compiler_params=pltpu.CompilerParams(
            dimension_semantics=("parallel",)),
    )(*inputs)


# -----------------------------------------------------------------------------
# Parameter-side glue (plain JAX, constant-foldable / precomputable per update)
# -----------------------------------------------------------------------------
def _wn_weight(p):
    """Weight normalization: w = g * v / ||v||, norm over (Cin, KH, KW)."""
    v = p["v"].astype(jnp.float32)
    norm = jnp.sqrt(jnp.sum(v * v, axis=(1, 2, 3), keepdims=True))
    return (p["g"].astype(jnp.float32) / norm) * v          # (Cout, Cin, K, K)


def _bn_fold(bn):
    """Eval-mode BatchNorm folded to per-channel scale/shift."""
    scale = bn["gamma"] / jnp.sqrt(bn["var"] + BN_EPS)
    shift = bn["beta"] - bn["mean"] * scale
    return scale, shift


def _band_weight(w_oihw, w_img, k, pad):
    """Fold kw taps + W-direction zero padding into a (K, W*Cin, Wo*Cout) matrix."""
    cout, cin = w_oihw.shape[0], w_oihw.shape[1]
    wgt = jnp.transpose(w_oihw, (2, 3, 1, 0))                # (K, K, Cin, Cout)
    wo = w_img + 2 * pad - k + 1
    u = jnp.arange(w_img)[:, None]                           # input column
    w = jnp.arange(wo)[None, :]                              # output column
    kw_idx = u - w + pad
    valid = ((kw_idx >= 0) & (kw_idx < k)).astype(jnp.float32)
    kw_safe = jnp.clip(kw_idx, 0, k - 1)
    band = wgt[:, kw_safe, :, :] * valid[None, :, :, None, None]
    band = jnp.transpose(band, (0, 1, 3, 2, 4))              # (K, W, Cin, Wo, Cout)
    return band.reshape(k, w_img * cin, wo * cout).astype(jnp.bfloat16)


# -----------------------------------------------------------------------------
# STResNet forward (Pallas path)
# -----------------------------------------------------------------------------
def stresnet_forward(params, x_nchw, *, cmid, cout_net, k, pad):
    N, cin, H, W = x_nchw.shape

    def conv(xp, p, k_, pad_, cin_, cout_, h_img, w_img, *,
             bn=None, relu=False, residual=None, out_dtype=jnp.bfloat16):
        band = _band_weight(_wn_weight(p), w_img, k_, pad_)
        scale = shift = None
        if bn is not None:
            scale, shift = _bn_fold(bn)
        return _fused_conv_layer(
            xp, band, H=h_img, W=w_img, Cin=cin_, Cout=cout_, K=k_, pad=pad_,
            scale=scale, shift=shift, bias=p["b"], residual=residual,
            relu_prologue=relu, out_dtype=out_dtype)

    # Enter lane-packed NHWC once; stay packed bf16 between layers.
    x = jnp.transpose(x_nchw, (0, 2, 3, 1)).astype(jnp.bfloat16)
    x = x.reshape(N, H, W * cin)

    x = conv(x, params["in_conv"], k, pad, cin, cmid, H, W)
    H1 = H + 2 * pad - k + 1
    W1 = W + 2 * pad - k + 1

    x_skip = conv(x, params["in_skip"], 1, 0, cmid, cmid, H1, W1)
    for blk, skp in zip(params["blocks"], params["skips"]):
        h = conv(x, blk["conv1"], 3, 1, cmid, cmid, H1, W1,
                 bn=blk["bn1"], relu=True)
        x = conv(h, blk["conv2"], 3, 1, cmid, cmid, H1, W1,
                 bn=blk["bn2"], relu=True, residual=x)
        x_skip = conv(x, skp, 1, 0, cmid, cmid, H1, W1, residual=x_skip)

    y = conv(x_skip, params["out_conv"], 1, 0, cmid, cout_net, H1, W1,
             bn=params["out_norm"], relu=True, out_dtype=jnp.float32)

    y = y.reshape(N, H1, W1, cout_net)
    return jnp.transpose(y, (0, 3, 1, 2))                    # back to NCHW


# -----------------------------------------------------------------------------
# Pure-JAX reference with the same bf16 quantization points
# -----------------------------------------------------------------------------
def stresnet_reference(params, x_nchw, *, k, pad):
    def wnconv(xb, p, k_, pad_):
        w_hwio = jnp.transpose(_wn_weight(p), (2, 3, 1, 0)).astype(jnp.bfloat16)
        y = jax.lax.conv_general_dilated(
            xb, w_hwio, window_strides=(1, 1),
            padding=((pad_, pad_), (pad_, pad_)),
            dimension_numbers=("NHWC", "HWIO", "NHWC"),
            preferred_element_type=jnp.float32)
        if p["b"] is not None:
            y = y + p["b"].astype(jnp.float32)
        return y                                             # f32 NHWC

    def bn_relu(xb, bn):
        scale, shift = _bn_fold(bn)
        a = xb.astype(jnp.float32) * scale + shift
        return jnp.maximum(a, 0.0).astype(jnp.bfloat16)

    x = jnp.transpose(x_nchw, (0, 2, 3, 1)).astype(jnp.bfloat16)
    x = wnconv(x, params["in_conv"], k, pad).astype(jnp.bfloat16)
    x_skip = wnconv(x, params["in_skip"], 1, 0).astype(jnp.bfloat16)
    for blk, skp in zip(params["blocks"], params["skips"]):
        h = bn_relu(x, blk["bn1"])
        h = wnconv(h, blk["conv1"], 3, 1).astype(jnp.bfloat16)
        h = bn_relu(h, blk["bn2"])
        h = wnconv(h, blk["conv2"], 3, 1)
        x = (h + x.astype(jnp.float32)).astype(jnp.bfloat16)
        s = wnconv(x, skp, 1, 0)
        x_skip = (s + x_skip.astype(jnp.float32)).astype(jnp.bfloat16)
    a = bn_relu(x_skip, params["out_norm"])
    y = wnconv(a, params["out_conv"], 1, 0)
    return jnp.transpose(y, (0, 3, 1, 2))


# -----------------------------------------------------------------------------
# Deterministic parameter construction
# -----------------------------------------------------------------------------
def _init_wnconv(key, cin, cout, k, use_bias):
    kv, kb = jax.random.split(key)
    v = jax.random.normal(kv, (cout, cin, k, k), jnp.float32) * 0.2
    g = jnp.sqrt(jnp.sum(v * v, axis=(1, 2, 3), keepdims=True))  # PyTorch wn init
    b = (jax.random.normal(kb, (cout,), jnp.float32) * 0.1) if use_bias else None
    return {"v": v, "g": g, "b": b}


def _init_bn(key, c):
    k1, k2, k3, k4 = jax.random.split(key, 4)
    return {"gamma": 1.0 + 0.1 * jax.random.normal(k1, (c,), jnp.float32),
            "beta": 0.1 * jax.random.normal(k2, (c,), jnp.float32),
            "mean": 0.1 * jax.random.normal(k3, (c,), jnp.float32),
            "var": 1.0 + 0.1 * jax.random.uniform(k4, (c,), jnp.float32)}


if __name__ == "__main__":
    N, CIN, CMID, COUT, NUM_BLOCKS = 2, 4, 8, 8, 2
    K, PAD = 3, 1
    H = W = 16

    kit = iter(jax.random.split(jax.random.PRNGKey(0), 64))
    params = {
        "in_conv": _init_wnconv(next(kit), CIN, CMID, K, True),
        "in_skip": _init_wnconv(next(kit), CMID, CMID, 1, True),
        "blocks": [],
        "skips": [],
        "out_norm": _init_bn(next(kit), CMID),
        "out_conv": _init_wnconv(next(kit), CMID, COUT, 1, True),
    }
    for _ in range(NUM_BLOCKS):
        params["blocks"].append({
            "bn1": _init_bn(next(kit), CMID),
            "conv1": _init_wnconv(next(kit), CMID, CMID, 3, False),
            "bn2": _init_bn(next(kit), CMID),
            "conv2": _init_wnconv(next(kit), CMID, CMID, 3, True),
        })
        params["skips"].append(_init_wnconv(next(kit), CMID, CMID, 1, True))

    x = jax.random.normal(next(kit), (N, CIN, H, W), jnp.float32)

    apply_fn = jax.jit(functools.partial(
        stresnet_forward, cmid=CMID, cout_net=COUT, k=K, pad=PAD))
    y = jax.block_until_ready(apply_fn(params, x))

    y_ref = stresnet_reference(params, x, k=K, pad=PAD)

    assert y.shape == (N, COUT, H, W), y.shape
    assert jnp.allclose(y, y_ref, atol=5e-3, rtol=5e-3), (
        float(jnp.max(jnp.abs(y - y_ref))))
    print("KERNEL_OK")
</pallas_src>

<mosaic_0001>
module attributes {stable_mosaic.version = 11 : i64} {
  func.func @_fused_conv_kernel(%arg0: i32, %arg1: memref<1x16x64xbf16, #tpu.memory_space<vmem>>, %arg2: memref<3x64x128xbf16, #tpu.memory_space<vmem>>, %arg3: memref<1x128xf32, #tpu.memory_space<vmem>>, %arg4: memref<1x16x128xbf16, #tpu.memory_space<vmem>>, %arg5: memref<18x64xbf16, #tpu.memory_space<vmem>>) attributes {dimension_semantics = [#tpu.dimension_semantics<parallel>], iteration_bounds = array<i64: 2>, scalar_prefetch = 0 : i64, scratch_operands = 1 : i64, tpu.core_type = #tpu.core_type<tc>, window_params = [{transform_indices = @transform_0, window_bounds = array<i64: 1, 16, 64>}, {pipeline_mode = #tpu.pipeline_mode<synchronous>, transform_indices = @transform_1, window_bounds = array<i64: 3, 64, 128>}, {pipeline_mode = #tpu.pipeline_mode<synchronous>, transform_indices = @transform_2, window_bounds = array<i64: 1, 128>}, {transform_indices = @transform_3, window_bounds = array<i64: 1, 16, 128>}]} {
    %c0 = arith.constant 0 : index
    %c0_0 = arith.constant 0 : index
    %c0_1 = arith.constant 0 : index
    %0 = vector.load %arg1[%c0, %c0_0, %c0_1] : memref<1x16x64xbf16, #tpu.memory_space<vmem>>, vector<1x16x64xbf16>
    %1 = vector.shape_cast %0 : vector<1x16x64xbf16> to vector<16x64xbf16>
    %2 = arith.extf %1 : vector<16x64xbf16> to vector<16x64xf32>
    %3 = arith.truncf %2 : vector<16x64xf32> to vector<16x64xbf16>
    %cst = arith.constant 0.000000e+00 : bf16
    %4 = vector.broadcast %cst : bf16 to vector<18x64xbf16>
    %c0_2 = arith.constant 0 : index
    %c0_3 = arith.constant 0 : index
    %5 = vector.load %arg5[%c0_2, %c0_3] : memref<18x64xbf16, #tpu.memory_space<vmem>>, vector<18x64xbf16>
    tpu.vector_store %arg5[%c0_2, %c0_3], %4 {strides = array<i32>} : memref<18x64xbf16, #tpu.memory_space<vmem>>, vector<18x64xbf16>,
    %c1 = arith.constant 1 : index
    %c0_4 = arith.constant 0 : index
    %6 = vector.load %arg5[%c1, %c0_4] : memref<18x64xbf16, #tpu.memory_space<vmem>>, vector<16x64xbf16>
    tpu.vector_store %arg5[%c1, %c0_4], %3 {strides = array<i32>} : memref<18x64xbf16, #tpu.memory_space<vmem>>, vector<16x64xbf16>,
    %c0_5 = arith.constant 0 : index
    %c0_6 = arith.constant 0 : index
    %7 = vector.load %arg5[%c0_5, %c0_6] : memref<18x64xbf16, #tpu.memory_space<vmem>>, vector<18x64xbf16>
    %cst_7 = arith.constant 0.000000e+00 : f32
    %8 = vector.broadcast %cst_7 : f32 to vector<16x128xf32>
    %9 = vector.extract_strided_slice %7 {offsets = [0, 0], sizes = [16, 64], strides = [1, 1]} : vector<18x64xbf16> to vector<16x64xbf16>
    %c0_8 = arith.constant 0 : index
    %c0_9 = arith.constant 0 : index
    %c0_10 = arith.constant 0 : index
    %10 = vector.load %arg2[%c0_8, %c0_9, %c0_10] : memref<3x64x128xbf16, #tpu.memory_space<vmem>>, vector<1x64x128xbf16>
    %11 = vector.shape_cast %10 : vector<1x64x128xbf16> to vector<64x128xbf16>
    %cst_11 = arith.constant dense<0.000000e+00> : vector<16x128xf32>
    %12 = tpu.matmul %9, %11, %cst_11 {dimension_numbers = #tpu.dot_dimension_numbers<[1], [0], [0], [1], [0, 0, 1, 1], [], []>} : vector<16x64xbf16>, vector<64x128xbf16>, vector<16x128xf32> -> vector<16x128xf32>
    %13 = arith.addf %8, %12 : vector<16x128xf32>
    %14 = vector.extract_strided_slice %7 {offsets = [1, 0], sizes = [16, 64], strides = [1, 1]} : vector<18x64xbf16> to vector<16x64xbf16>
    %c1_12 = arith.constant 1 : index
    %c0_13 = arith.constant 0 : index
    %c0_14 = arith.constant 0 : index
    %15 = vector.load %arg2[%c1_12, %c0_13, %c0_14] : memref<3x64x128xbf16, #tpu.memory_space<vmem>>, vector<1x64x128xbf16>
    %16 = vector.shape_cast %15 : vector<1x64x128xbf16> to vector<64x128xbf16>
    %cst_15 = arith.constant dense<0.000000e+00> : vector<16x128xf32>
    %17 = tpu.matmul %14, %16, %cst_15 {dimension_numbers = #tpu.dot_dimension_numbers<[1], [0], [0], [1], [0, 0, 1, 1], [], []>} : vector<16x64xbf16>, vector<64x128xbf16>, vector<16x128xf32> -> vector<16x128xf32>
    %18 = arith.addf %13, %17 : vector<16x128xf32>
    %19 = vector.extract_strided_slice %7 {offsets = [2, 0], sizes = [16, 64], strides = [1, 1]} : vector<18x64xbf16> to vector<16x64xbf16>
    %c2 = arith.constant 2 : index
    %c0_16 = arith.constant 0 : index
    %c0_17 = arith.constant 0 : index
    %20 = vector.load %arg2[%c2, %c0_16, %c0_17] : memref<3x64x128xbf16, #tpu.memory_space<vmem>>, vector<1x64x128xbf16>
    %21 = vector.shape_cast %20 : vector<1x64x128xbf16> to vector<64x128xbf16>
    %cst_18 = arith.constant dense<0.000000e+00> : vector<16x128xf32>
    %22 = tpu.matmul %19, %21, %cst_18 {dimension_numbers = #tpu.dot_dimension_numbers<[1], [0], [0], [1], [0, 0, 1, 1], [], []>} : vector<16x64xbf16>, vector<64x128xbf16>, vector<16x128xf32> -> vector<16x128xf32>
    %23 = arith.addf %18, %22 : vector<16x128xf32>
    %c0_19 = arith.constant 0 : index
    %c0_20 = arith.constant 0 : index
    %24 = vector.load %arg3[%c0_19, %c0_20] : memref<1x128xf32, #tpu.memory_space<vmem>>, vector<1x128xf32>
    %25 = vector.broadcast %24 : vector<1x128xf32> to vector<16x128xf32>
    %26 = arith.addf %23, %25 : vector<16x128xf32>
    %27 = arith.truncf %26 : vector<16x128xf32> to vector<16x128xbf16>
    %28 = vector.shape_cast %27 : vector<16x128xbf16> to vector<1x16x128xbf16>
    %c0_21 = arith.constant 0 : index
    %c0_22 = arith.constant 0 : index
    %c0_23 = arith.constant 0 : index
    %29 = vector.load %arg4[%c0_21, %c0_22, %c0_23] : memref<1x16x128xbf16, #tpu.memory_space<vmem>>, vector<1x16x128xbf16>
    tpu.vector_store %arg4[%c0_21, %c0_22, %c0_23], %28 {strides = array<i32>} : memref<1x16x128xbf16, #tpu.memory_space<vmem>>, vector<1x16x128xbf16>,
    return
  }
  func.func @transform_0(%arg0: i32) -> (i32, i32, i32) {
    %c0_i32 = arith.constant 0 : i32
    %c0_i32_0 = arith.constant 0 : i32
    %c0_i32_1 = arith.constant 0 : i32
    return %arg0, %c0_i32, %c0_i32_0 : i32, i32, i32
  }
  func.func @transform_1(%arg0: i32) -> (i32, i32, i32) {
    %c0_i32 = arith.constant 0 : i32
    %c0_i32_0 = arith.constant 0 : i32
    %c0_i32_1 = arith.constant 0 : i32
    %c0_i32_2 = arith.constant 0 : i32
    return %c0_i32, %c0_i32_0, %c0_i32_1 : i32, i32, i32
  }
  func.func @transform_2(%arg0: i32) -> (i32, i32) {
    %c0_i32 = arith.constant 0 : i32
    %c0_i32_0 = arith.constant 0 : i32
    %c0_i32_1 = arith.constant 0 : i32
    return %c0_i32, %c0_i32_0 : i32, i32
  }
  func.func @transform_3(%arg0: i32) -> (i32, i32, i32) {
    %c0_i32 = arith.constant 0 : i32
    %c0_i32_0 = arith.constant 0 : i32
    %c0_i32_1 = arith.constant 0 : i32
    return %arg0, %c0_i32, %c0_i32_0 : i32, i32, i32
  }
}

module attributes {stable_mosaic.version = 11 : i64} {
  func.func @_fused_conv_kernel(%arg0: i32, %arg1: memref<1x16x128xbf16, #tpu.memory_space<vmem>>, %arg2: memref<1x128xf32, #tpu.memory_space<vmem>>, %arg3: memref<1x128xf32, #tpu.memory_space<vmem>>, %arg4: memref<3x128x128xbf16, #tpu.memory_space<vmem>>, %arg5: memref<1x16x128xbf16, #tpu.memory_space<vmem>>, %arg6: memref<18x128xbf16, #tpu.memory_space<vmem>>) attributes {dimension_semantics = [#tpu.dimension_semantics<parallel>], iteration_bounds = array<i64: 2>, scalar_prefetch = 0 : i64, scratch_operands = 1 : i64, tpu.core_type = #tpu.core_type<tc>, window_params = [{transform_indices = @transform_0, window_bounds = array<i64: 1, 16, 128>}, {pipeline_mode = #tpu.pipeline_mode<synchronous>, transform_indices = @transform_1, window_bounds = array<i64: 1, 128>}, {pipeline_mode = #tpu.pipeline_mode<synchronous>, transform_indices = @transform_2, window_bounds = array<i64: 1, 128>}, {pipeline_mode = #tpu.pipeline_mode<synchronous>, transform_indices = @transform_3, window_bounds = array<i64: 3, 128, 128>}, {transform_indices = @transform_4, window_bounds = array<i64: 1, 16, 128>}]} {
    %c0 = arith.constant 0 : index
    %c0_0 = arith.constant 0 : index
    %c0_1 = arith.constant 0 : index
    %0 = vector.load %arg1[%c0, %c0_0, %c0_1] : memref<1x16x128xbf16, #tpu.memory_space<vmem>>, vector<1x16x128xbf16>
    %1 = vector.shape_cast %0 : vector<1x16x128xbf16> to vector<16x128xbf16>
    %2 = arith.extf %1 : vector<16x128xbf16> to vector<16x128xf32>
    %c0_2 = arith.constant 0 : index
    %c0_3 = arith.constant 0 : index
    %3 = vector.load %arg2[%c0_2, %c0_3] : memref<1x128xf32, #tpu.memory_space<vmem>>, vector<1x128xf32>
    %4 = vector.broadcast %3 : vector<1x128xf32> to vector<16x128xf32>
    %5 = arith.mulf %2, %4 : vector<16x128xf32>
    %c0_4 = arith.constant 0 : index
    %c0_5 = arith.constant 0 : index
    %6 = vector.load %arg3[%c0_4, %c0_5] : memref<1x128xf32, #tpu.memory_space<vmem>>, vector<1x128xf32>
    %7 = vector.broadcast %6 : vector<1x128xf32> to vector<16x128xf32>
    %8 = arith.addf %5, %7 : vector<16x128xf32>
    %cst = arith.constant 0.000000e+00 : f32
    %9 = vector.broadcast %cst : f32 to vector<16x128xf32>
    %10 = arith.maximumf %8, %9 : vector<16x128xf32>
    %11 = arith.truncf %10 : vector<16x128xf32> to vector<16x128xbf16>
    %cst_6 = arith.constant 0.000000e+00 : bf16
    %12 = vector.broadcast %cst_6 : bf16 to vector<18x128xbf16>
    %c0_7 = arith.constant 0 : index
    %c0_8 = arith.constant 0 : index
    %13 = vector.load %arg6[%c0_7, %c0_8] : memref<18x128xbf16, #tpu.memory_space<vmem>>, vector<18x128xbf16>
    tpu.vector_store %arg6[%c0_7, %c0_8], %12 {strides = array<i32>} : memref<18x128xbf16, #tpu.memory_space<vmem>>, vector<18x128xbf16>,
    %c1 = arith.constant 1 : index
    %c0_9 = arith.constant 0 : index
    %14 = vector.load %arg6[%c1, %c0_9] : memref<18x128xbf16, #tpu.memory_space<vmem>>, vector<16x128xbf16>
    tpu.vector_store %arg6[%c1, %c0_9], %11 {strides = array<i32>} : memref<18x128xbf16, #tpu.memory_space<vmem>>, vector<16x128xbf16>,
    %c0_10 = arith.constant 0 : index
    %c0_11 = arith.constant 0 : index
    %15 = vector.load %arg6[%c0_10, %c0_11] : memref<18x128xbf16, #tpu.memory_space<vmem>>, vector<18x128xbf16>
    %cst_12 = arith.constant 0.000000e+00 : f32
    %16 = vector.broadcast %cst_12 : f32 to vector<16x128xf32>
    %17 = vector.extract_strided_slice %15 {offsets = [0, 0], sizes = [16, 128], strides = [1, 1]} : vector<18x128xbf16> to vector<16x128xbf16>
    %c0_13 = arith.constant 0 : index
    %c0_14 = arith.constant 0 : index
    %c0_15 = arith.constant 0 : index
    %18 = vector.load %arg4[%c0_13, %c0_14, %c0_15] : memref<3x128x128xbf16, #tpu.memory_space<vmem>>, vector<1x128x128xbf16>
    %19 = vector.shape_cast %18 : vector<1x128x128xbf16> to vector<128x128xbf16>
    %cst_16 = arith.constant dense<0.000000e+00> : vector<16x128xf32>
    %20 = tpu.matmul %17, %19, %cst_16 {dimension_numbers = #tpu.dot_dimension_numbers<[1], [0], [0], [1], [0, 0, 1, 1], [], []>} : vector<16x128xbf16>, vector<128x128xbf16>, vector<16x128xf32> -> vector<16x128xf32>
    %21 = arith.addf %16, %20 : vector<16x128xf32>
    %22 = vector.extract_strided_slice %15 {offsets = [1, 0], sizes = [16, 128], strides = [1, 1]} : vector<18x128xbf16> to vector<16x128xbf16>
    %c1_17 = arith.constant 1 : index
    %c0_18 = arith.constant 0 : index
    %c0_19 = arith.constant 0 : index
    %23 = vector.load %arg4[%c1_17, %c0_18, %c0_19] : memref<3x128x128xbf16, #tpu.memory_space<vmem>>, vector<1x128x128xbf16>
    %24 = vector.shape_cast %23 : vector<1x128x128xbf16> to vector<128x128xbf16>
    %cst_20 = arith.constant dense<0.000000e+00> : vector<16x128xf32>
    %25 = tpu.matmul %22, %24, %cst_20 {dimension_numbers = #tpu.dot_dimension_numbers<[1], [0], [0], [1], [0, 0, 1, 1], [], []>} : vector<16x128xbf16>, vector<128x128xbf16>, vector<16x128xf32> -> vector<16x128xf32>
    %26 = arith.addf %21, %25 : vector<16x128xf32>
    %27 = vector.extract_strided_slice %15 {offsets = [2, 0], sizes = [16, 128], strides = [1, 1]} : vector<18x128xbf16> to vector<16x128xbf16>
    %c2 = arith.constant 2 : index
    %c0_21 = arith.constant 0 : index
    %c0_22 = arith.constant 0 : index
    %28 = vector.load %arg4[%c2, %c0_21, %c0_22] : memref<3x128x128xbf16, #tpu.memory_space<vmem>>, vector<1x128x128xbf16>
    %29 = vector.shape_cast %28 : vector<1x128x128xbf16> to vector<128x128xbf16>
    %cst_23 = arith.constant dense<0.000000e+00> : vector<16x128xf32>
    %30 = tpu.matmul %27, %29, %cst_23 {dimension_numbers = #tpu.dot_dimension_numbers<[1], [0], [0], [1], [0, 0, 1, 1], [], []>} : vector<16x128xbf16>, vector<128x128xbf16>, vector<16x128xf32> -> vector<16x128xf32>
    %31 = arith.addf %26, %30 : vector<16x128xf32>
    %32 = arith.truncf %31 : vector<16x128xf32> to vector<16x128xbf16>
    %33 = vector.shape_cast %32 : vector<16x128xbf16> to vector<1x16x128xbf16>
    %c0_24 = arith.constant 0 : index
    %c0_25 = arith.constant 0 : index
    %c0_26 = arith.constant 0 : index
    %34 = vector.load %arg5[%c0_24, %c0_25, %c0_26] : memref<1x16x128xbf16, #tpu.memory_space<vmem>>, vector<1x16x128xbf16>
    tpu.vector_store %arg5[%c0_24, %c0_25, %c0_26], %33 {strides = array<i32>} : memref<1x16x128xbf16, #tpu.memory_space<vmem>>, vector<1x16x128xbf16>,
    return
  }
  func.func @transform_0(%arg0: i32) -> (i32, i32, i32) {
    %c0_i32 = arith.constant 0 : i32
    %c0_i32_0 = arith.constant 0 : i32
    %c0_i32_1 = arith.constant 0 : i32
    return %arg0, %c0_i32, %c0_i32_0 : i32, i32, i32
  }
  func.func @transform_1(%arg0: i32) -> (i32, i32) {
    %c0_i32 = arith.constant 0 : i32
    %c0_i32_0 = arith.constant 0 : i32
    %c0_i32_1 = arith.constant 0 : i32
    return %c0_i32, %c0_i32_0 : i32, i32
  }
  func.func @transform_2(%arg0: i32) -> (i32, i32) {
    %c0_i32 = arith.constant 0 : i32
    %c0_i32_0 = arith.constant 0 : i32
    %c0_i32_1 = arith.constant 0 : i32
    return %c0_i32, %c0_i32_0 : i32, i32
  }
  func.func @transform_3(%arg0: i32) -> (i32, i32, i32) {
    %c0_i32 = arith.constant 0 : i32
    %c0_i32_0 = arith.constant 0 : i32
    %c0_i32_1 = arith.constant 0 : i32
    %c0_i32_2 = arith.constant 0 : i32
    return %c0_i32, %c0_i32_0, %c0_i32_1 : i32, i32, i32
  }
  func.func @transform_4(%arg0: i32) -> (i32, i32, i32) {
    %c0_i32 = arith.constant 0 : i32
    %c0_i32_0 = arith.constant 0 : i32
    %c0_i32_1 = arith.constant 0 : i32
    return %arg0, %c0_i32, %c0_i32_0 : i32, i32, i32
  }
}

module attributes {stable_mosaic.version = 11 : i64} {
  func.func @_fused_conv_kernel(%arg0: i32, %arg1: memref<1x16x128xbf16, #tpu.memory_space<vmem>>, %arg2: memref<1x128xf32, #tpu.memory_space<vmem>>, %arg3: memref<1x128xf32, #tpu.memory_space<vmem>>, %arg4: memref<3x128x128xbf16, #tpu.memory_space<vmem>>, %arg5: memref<1x128xf32, #tpu.memory_space<vmem>>, %arg6: memref<1x16x128xbf16, #tpu.memory_space<vmem>>, %arg7: memref<1x16x128xbf16, #tpu.memory_space<vmem>>, %arg8: memref<18x128xbf16, #tpu.memory_space<vmem>>) attributes {dimension_semantics = [#tpu.dimension_semantics<parallel>], iteration_bounds = array<i64: 2>, scalar_prefetch = 0 : i64, scratch_operands = 1 : i64, tpu.core_type = #tpu.core_type<tc>, window_params = [{transform_indices = @transform_0, window_bounds = array<i64: 1, 16, 128>}, {pipeline_mode = #tpu.pipeline_mode<synchronous>, transform_indices = @transform_1, window_bounds = array<i64: 1, 128>}, {pipeline_mode = #tpu.pipeline_mode<synchronous>, transform_indices = @transform_2, window_bounds = array<i64: 1, 128>}, {pipeline_mode = #tpu.pipeline_mode<synchronous>, transform_indices = @transform_3, window_bounds = array<i64: 3, 128, 128>}, {pipeline_mode = #tpu.pipeline_mode<synchronous>, transform_indices = @transform_4, window_bounds = array<i64: 1, 128>}, {transform_indices = @transform_5, window_bounds = array<i64: 1, 16, 128>}, {transform_indices = @transform_6, window_bounds = array<i64: 1, 16, 128>}]} {
    %c0 = arith.constant 0 : index
    %c0_0 = arith.constant 0 : index
    %c0_1 = arith.constant 0 : index
    %0 = vector.load %arg1[%c0, %c0_0, %c0_1] : memref<1x16x128xbf16, #tpu.memory_space<vmem>>, vector<1x16x128xbf16>
    %1 = vector.shape_cast %0 : vector<1x16x128xbf16> to vector<16x128xbf16>
    %2 = arith.extf %1 : vector<16x128xbf16> to vector<16x128xf32>
    %c0_2 = arith.constant 0 : index
    %c0_3 = arith.constant 0 : index
    %3 = vector.load %arg2[%c0_2, %c0_3] : memref<1x128xf32, #tpu.memory_space<vmem>>, vector<1x128xf32>
    %4 = vector.broadcast %3 : vector<1x128xf32> to vector<16x128xf32>
    %5 = arith.mulf %2, %4 : vector<16x128xf32>
    %c0_4 = arith.constant 0 : index
    %c0_5 = arith.constant 0 : index
    %6 = vector.load %arg3[%c0_4, %c0_5] : memref<1x128xf32, #tpu.memory_space<vmem>>, vector<1x128xf32>
    %7 = vector.broadcast %6 : vector<1x128xf32> to vector<16x128xf32>
    %8 = arith.addf %5, %7 : vector<16x128xf32>
    %cst = arith.constant 0.000000e+00 : f32
    %9 = vector.broadcast %cst : f32 to vector<16x128xf32>
    %10 = arith.maximumf %8, %9 : vector<16x128xf32>
    %11 = arith.truncf %10 : vector<16x128xf32> to vector<16x128xbf16>
    %cst_6 = arith.constant 0.000000e+00 : bf16
    %12 = vector.broadcast %cst_6 : bf16 to vector<18x128xbf16>
    %c0_7 = arith.constant 0 : index
    %c0_8 = arith.constant 0 : index
    %13 = vector.load %arg8[%c0_7, %c0_8] : memref<18x128xbf16, #tpu.memory_space<vmem>>, vector<18x128xbf16>
    tpu.vector_store %arg8[%c0_7, %c0_8], %12 {strides = array<i32>} : memref<18x128xbf16, #tpu.memory_space<vmem>>, vector<18x128xbf16>,
    %c1 = arith.constant 1 : index
    %c0_9 = arith.constant 0 : index
    %14 = vector.load %arg8[%c1, %c0_9] : memref<18x128xbf16, #tpu.memory_space<vmem>>, vector<16x128xbf16>
    tpu.vector_store %arg8[%c1, %c0_9], %11 {strides = array<i32>} : memref<18x128xbf16, #tpu.memory_space<vmem>>, vector<16x128xbf16>,
    %c0_10 = arith.constant 0 : index
    %c0_11 = arith.constant 0 : index
    %15 = vector.load %arg8[%c0_10, %c0_11] : memref<18x128xbf16, #tpu.memory_space<vmem>>, vector<18x128xbf16>
    %cst_12 = arith.constant 0.000000e+00 : f32
    %16 = vector.broadcast %cst_12 : f32 to vector<16x128xf32>
    %17 = vector.extract_strided_slice %15 {offsets = [0, 0], sizes = [16, 128], strides = [1, 1]} : vector<18x128xbf16> to vector<16x128xbf16>
    %c0_13 = arith.constant 0 : index
    %c0_14 = arith.constant 0 : index
    %c0_15 = arith.constant 0 : index
    %18 = vector.load %arg4[%c0_13, %c0_14, %c0_15] : memref<3x128x128xbf16, #tpu.memory_space<vmem>>, vector<1x128x128xbf16>
    %19 = vector.shape_cast %18 : vector<1x128x128xbf16> to vector<128x128xbf16>
    %cst_16 = arith.constant dense<0.000000e+00> : vector<16x128xf32>
    %20 = tpu.matmul %17, %19, %cst_16 {dimension_numbers = #tpu.dot_dimension_numbers<[1], [0], [0], [1], [0, 0, 1, 1], [], []>} : vector<16x128xbf16>, vector<128x128xbf16>, vector<16x128xf32> -> vector<16x128xf32>
    %21 = arith.addf %16, %20 : vector<16x128xf32>
    %22 = vector.extract_strided_slice %15 {offsets = [1, 0], sizes = [16, 128], strides = [1, 1]} : vector<18x128xbf16> to vector<16x128xbf16>
    %c1_17 = arith.constant 1 : index
    %c0_18 = arith.constant 0 : index
    %c0_19 = arith.constant 0 : index
    %23 = vector.load %arg4[%c1_17, %c0_18, %c0_19] : memref<3x128x128xbf16, #tpu.memory_space<vmem>>, vector<1x128x128xbf16>
    %24 = vector.shape_cast %23 : vector<1x128x128xbf16> to vector<128x128xbf16>
    %cst_20 = arith.constant dense<0.000000e+00> : vector<16x128xf32>
    %25 = tpu.matmul %22, %24, %cst_20 {dimension_numbers = #tpu.dot_dimension_numbers<[1], [0], [0], [1], [0, 0, 1, 1], [], []>} : vector<16x128xbf16>, vector<128x128xbf16>, vector<16x128xf32> -> vector<16x128xf32>
    %26 = arith.addf %21, %25 : vector<16x128xf32>
    %27 = vector.extract_strided_slice %15 {offsets = [2, 0], sizes = [16, 128], strides = [1, 1]} : vector<18x128xbf16> to vector<16x128xbf16>
    %c2 = arith.constant 2 : index
    %c0_21 = arith.constant 0 : index
    %c0_22 = arith.constant 0 : index
    %28 = vector.load %arg4[%c2, %c0_21, %c0_22] : memref<3x128x128xbf16, #tpu.memory_space<vmem>>, vector<1x128x128xbf16>
    %29 = vector.shape_cast %28 : vector<1x128x128xbf16> to vector<128x128xbf16>
    %cst_23 = arith.constant dense<0.000000e+00> : vector<16x128xf32>
    %30 = tpu.matmul %27, %29, %cst_23 {dimension_numbers = #tpu.dot_dimension_numbers<[1], [0], [0], [1], [0, 0, 1, 1], [], []>} : vector<16x128xbf16>, vector<128x128xbf16>, vector<16x128xf32> -> vector<16x128xf32>
    %31 = arith.addf %26, %30 : vector<16x128xf32>
    %c0_24 = arith.constant 0 : index
    %c0_25 = arith.constant 0 : index
    %32 = vector.load %arg5[%c0_24, %c0_25] : memref<1x128xf32, #tpu.memory_space<vmem>>, vector<1x128xf32>
    %33 = vector.broadcast %32 : vector<1x128xf32> to vector<16x128xf32>
    %34 = arith.addf %31, %33 : vector<16x128xf32>
    %c0_26 = arith.constant 0 : index
    %c0_27 = arith.constant 0 : index
    %c0_28 = arith.constant 0 : index
    %35 = vector.load %arg6[%c0_26, %c0_27, %c0_28] : memref<1x16x128xbf16, #tpu.memory_space<vmem>>, vector<1x16x128xbf16>
    %36 = vector.shape_cast %35 : vector<1x16x128xbf16> to vector<16x128xbf16>
    %37 = arith.extf %36 : vector<16x128xbf16> to vector<16x128xf32>
    %38 = arith.addf %34, %37 : vector<16x128xf32>
    %39 = arith.truncf %38 : vector<16x128xf32> to vector<16x128xbf16>
    %40 = vector.shape_cast %39 : vector<16x128xbf16> to vector<1x16x128xbf16>
    %c0_29 = arith.constant 0 : index
    %c0_30 = arith.constant 0 : index
    %c0_31 = arith.constant 0 : index
    %41 = vector.load %arg7[%c0_29, %c0_30, %c0_31] : memref<1x16x128xbf16, #tpu.memory_space<vmem>>, vector<1x16x128xbf16>
    tpu.vector_store %arg7[%c0_29, %c0_30, %c0_31], %40 {strides = array<i32>} : memref<1x16x128xbf16, #tpu.memory_space<vmem>>, vector<1x16x128xbf16>,
    return
  }
  func.func @transform_0(%arg0: i32) -> (i32, i32, i32) {
    %c0_i32 = arith.constant 0 : i32
    %c0_i32_0 = arith.constant 0 : i32
    %c0_i32_1 = arith.constant 0 : i32
    return %arg0, %c0_i32, %c0_i32_0 : i32, i32, i32
  }
  func.func @transform_1(%arg0: i32) -> (i32, i32) {
    %c0_i32 = arith.constant 0 : i32
    %c0_i32_0 = arith.constant 0 : i32
    %c0_i32_1 = arith.constant 0 : i32
    return %c0_i32, %c0_i32_0 : i32, i32
  }
  func.func @transform_2(%arg0: i32) -> (i32, i32) {
    %c0_i32 = arith.constant 0 : i32
    %c0_i32_0 = arith.constant 0 : i32
    %c0_i32_1 = arith.constant 0 : i32
    return %c0_i32, %c0_i32_0 : i32, i32
  }
  func.func @transform_3(%arg0: i32) -> (i32, i32, i32) {
    %c0_i32 = arith.constant 0 : i32
    %c0_i32_0 = arith.constant 0 : i32
    %c0_i32_1 = arith.constant 0 : i32
    %c0_i32_2 = arith.constant 0 : i32
    return %c0_i32, %c0_i32_0, %c0_i32_1 : i32, i32, i32
  }
  func.func @transform_4(%arg0: i32) -> (i32, i32) {
    %c0_i32 = arith.constant 0 : i32
    %c0_i32_0 = arith.constant 0 : i32
    %c0_i32_1 = arith.constant 0 : i32
    return %c0_i32, %c0_i32_0 : i32, i32
  }
  func.func @transform_5(%arg0: i32) -> (i32, i32, i32) {
    %c0_i32 = arith.constant 0 : i32
    %c0_i32_0 = arith.constant 0 : i32
    %c0_i32_1 = arith.constant 0 : i32
    return %arg0, %c0_i32, %c0_i32_0 : i32, i32, i32
  }
  func.func @transform_6(%arg0: i32) -> (i32, i32, i32) {
    %c0_i32 = arith.constant 0 : i32
    %c0_i32_0 = arith.constant 0 : i32
    %c0_i32_1 = arith.constant 0 : i32
    return %arg0, %c0_i32, %c0_i32_0 : i32, i32, i32
  }
}

module attributes {stable_mosaic.version = 11 : i64} {
  func.func @_fused_conv_kernel(%arg0: i32, %arg1: memref<1x16x128xbf16, #tpu.memory_space<vmem>>, %arg2: memref<1x128x128xbf16, #tpu.memory_space<vmem>>, %arg3: memref<1x128xf32, #tpu.memory_space<vmem>>, %arg4: memref<1x16x128xbf16, #tpu.memory_space<vmem>>) attributes {dimension_semantics = [#tpu.dimension_semantics<parallel>], iteration_bounds = array<i64: 2>, scalar_prefetch = 0 : i64, scratch_operands = 0 : i64, tpu.core_type = #tpu.core_type<tc>, window_params = [{transform_indices = @transform_0, window_bounds = array<i64: 1, 16, 128>}, {pipeline_mode = #tpu.pipeline_mode<synchronous>, transform_indices = @transform_1, window_bounds = array<i64: 1, 128, 128>}, {pipeline_mode = #tpu.pipeline_mode<synchronous>, transform_indices = @transform_2, window_bounds = array<i64: 1, 128>}, {transform_indices = @transform_3, window_bounds = array<i64: 1, 16, 128>}]} {
    %c0 = arith.constant 0 : index
    %c0_0 = arith.constant 0 : index
    %c0_1 = arith.constant 0 : index
    %0 = vector.load %arg1[%c0, %c0_0, %c0_1] : memref<1x16x128xbf16, #tpu.memory_space<vmem>>, vector<1x16x128xbf16>
    %1 = vector.shape_cast %0 : vector<1x16x128xbf16> to vector<16x128xbf16>
    %2 = arith.extf %1 : vector<16x128xbf16> to vector<16x128xf32>
    %3 = arith.truncf %2 : vector<16x128xf32> to vector<16x128xbf16>
    %cst = arith.constant 0.000000e+00 : f32
    %4 = vector.broadcast %cst : f32 to vector<16x128xf32>
    %c0_2 = arith.constant 0 : index
    %c0_3 = arith.constant 0 : index
    %c0_4 = arith.constant 0 : index
    %5 = vector.load %arg2[%c0_2, %c0_3, %c0_4] : memref<1x128x128xbf16, #tpu.memory_space<vmem>>, vector<1x128x128xbf16>
    %6 = vector.shape_cast %5 : vector<1x128x128xbf16> to vector<128x128xbf16>
    %cst_5 = arith.constant dense<0.000000e+00> : vector<16x128xf32>
    %7 = tpu.matmul %3, %6, %cst_5 {dimension_numbers = #tpu.dot_dimension_numbers<[1], [0], [0], [1], [0, 0, 1, 1], [], []>} : vector<16x128xbf16>, vector<128x128xbf16>, vector<16x128xf32> -> vector<16x128xf32>
    %8 = arith.addf %4, %7 : vector<16x128xf32>
    %c0_6 = arith.constant 0 : index
    %c0_7 = arith.constant 0 : index
    %9 = vector.load %arg3[%c0_6, %c0_7] : memref<1x128xf32, #tpu.memory_space<vmem>>, vector<1x128xf32>
    %10 = vector.broadcast %9 : vector<1x128xf32> to vector<16x128xf32>
    %11 = arith.addf %8, %10 : vector<16x128xf32>
    %12 = arith.truncf %11 : vector<16x128xf32> to vector<16x128xbf16>
    %13 = vector.shape_cast %12 : vector<16x128xbf16> to vector<1x16x128xbf16>
    %c0_8 = arith.constant 0 : index
    %c0_9 = arith.constant 0 : index
    %c0_10 = arith.constant 0 : index
    %14 = vector.load %arg4[%c0_8, %c0_9, %c0_10] : memref<1x16x128xbf16, #tpu.memory_space<vmem>>, vector<1x16x128xbf16>
    tpu.vector_store %arg4[%c0_8, %c0_9, %c0_10], %13 {strides = array<i32>} : memref<1x16x128xbf16, #tpu.memory_space<vmem>>, vector<1x16x128xbf16>,
    return
  }
  func.func @transform_0(%arg0: i32) -> (i32, i32, i32) {
    %c0_i32 = arith.constant 0 : i32
    %c0_i32_0 = arith.constant 0 : i32
    %c0_i32_1 = arith.constant 0 : i32
    return %arg0, %c0_i32, %c0_i32_0 : i32, i32, i32
  }
  func.func @transform_1(%arg0: i32) -> (i32, i32, i32) {
    %c0_i32 = arith.constant 0 : i32
    %c0_i32_0 = arith.constant 0 : i32
    %c0_i32_1 = arith.constant 0 : i32
    %c0_i32_2 = arith.constant 0 : i32
    return %c0_i32, %c0_i32_0, %c0_i32_1 : i32, i32, i32
  }
  func.func @transform_2(%arg0: i32) -> (i32, i32) {
    %c0_i32 = arith.constant 0 : i32
    %c0_i32_0 = arith.constant 0 : i32
    %c0_i32_1 = arith.constant 0 : i32
    return %c0_i32, %c0_i32_0 : i32, i32
  }
  func.func @transform_3(%arg0: i32) -> (i32, i32, i32) {
    %c0_i32 = arith.constant 0 : i32
    %c0_i32_0 = arith.constant 0 : i32
    %c0_i32_1 = arith.constant 0 : i32
    return %arg0, %c0_i32, %c0_i32_0 : i32, i32, i32
  }
}

module attributes {stable_mosaic.version = 11 : i64} {
  func.func @_fused_conv_kernel(%arg0: i32, %arg1: memref<1x16x128xbf16, #tpu.memory_space<vmem>>, %arg2: memref<1x128x128xbf16, #tpu.memory_space<vmem>>, %arg3: memref<1x128xf32, #tpu.memory_space<vmem>>, %arg4: memref<1x16x128xbf16, #tpu.memory_space<vmem>>, %arg5: memref<1x16x128xbf16, #tpu.memory_space<vmem>>) attributes {dimension_semantics = [#tpu.dimension_semantics<parallel>], iteration_bounds = array<i64: 2>, scalar_prefetch = 0 : i64, scratch_operands = 0 : i64, tpu.core_type = #tpu.core_type<tc>, window_params = [{transform_indices = @transform_0, window_bounds = array<i64: 1, 16, 128>}, {pipeline_mode = #tpu.pipeline_mode<synchronous>, transform_indices = @transform_1, window_bounds = array<i64: 1, 128, 128>}, {pipeline_mode = #tpu.pipeline_mode<synchronous>, transform_indices = @transform_2, window_bounds = array<i64: 1, 128>}, {transform_indices = @transform_3, window_bounds = array<i64: 1, 16, 128>}, {transform_indices = @transform_4, window_bounds = array<i64: 1, 16, 128>}]} {
    %c0 = arith.constant 0 : index
    %c0_0 = arith.constant 0 : index
    %c0_1 = arith.constant 0 : index
    %0 = vector.load %arg1[%c0, %c0_0, %c0_1] : memref<1x16x128xbf16, #tpu.memory_space<vmem>>, vector<1x16x128xbf16>
    %1 = vector.shape_cast %0 : vector<1x16x128xbf16> to vector<16x128xbf16>
    %2 = arith.extf %1 : vector<16x128xbf16> to vector<16x128xf32>
    %3 = arith.truncf %2 : vector<16x128xf32> to vector<16x128xbf16>
    %cst = arith.constant 0.000000e+00 : f32
    %4 = vector.broadcast %cst : f32 to vector<16x128xf32>
    %c0_2 = arith.constant 0 : index
    %c0_3 = arith.constant 0 : index
    %c0_4 = arith.constant 0 : index
    %5 = vector.load %arg2[%c0_2, %c0_3, %c0_4] : memref<1x128x128xbf16, #tpu.memory_space<vmem>>, vector<1x128x128xbf16>
    %6 = vector.shape_cast %5 : vector<1x128x128xbf16> to vector<128x128xbf16>
    %cst_5 = arith.constant dense<0.000000e+00> : vector<16x128xf32>
    %7 = tpu.matmul %3, %6, %cst_5 {dimension_numbers = #tpu.dot_dimension_numbers<[1], [0], [0], [1], [0, 0, 1, 1], [], []>} : vector<16x128xbf16>, vector<128x128xbf16>, vector<16x128xf32> -> vector<16x128xf32>
    %8 = arith.addf %4, %7 : vector<16x128xf32>
    %c0_6 = arith.constant 0 : index
    %c0_7 = arith.constant 0 : index
    %9 = vector.load %arg3[%c0_6, %c0_7] : memref<1x128xf32, #tpu.memory_space<vmem>>, vector<1x128xf32>
    %10 = vector.broadcast %9 : vector<1x128xf32> to vector<16x128xf32>
    %11 = arith.addf %8, %10 : vector<16x128xf32>
    %c0_8 = arith.constant 0 : index
    %c0_9 = arith.constant 0 : index
    %c0_10 = arith.constant 0 : index
    %12 = vector.load %arg4[%c0_8, %c0_9, %c0_10] : memref<1x16x128xbf16, #tpu.memory_space<vmem>>, vector<1x16x128xbf16>
    %13 = vector.shape_cast %12 : vector<1x16x128xbf16> to vector<16x128xbf16>
    %14 = arith.extf %13 : vector<16x128xbf16> to vector<16x128xf32>
    %15 = arith.addf %11, %14 : vector<16x128xf32>
    %16 = arith.truncf %15 : vector<16x128xf32> to vector<16x128xbf16>
    %17 = vector.shape_cast %16 : vector<16x128xbf16> to vector<1x16x128xbf16>
    %c0_11 = arith.constant 0 : index
    %c0_12 = arith.constant 0 : index
    %c0_13 = arith.constant 0 : index
    %18 = vector.load %arg5[%c0_11, %c0_12, %c0_13] : memref<1x16x128xbf16, #tpu.memory_space<vmem>>, vector<1x16x128xbf16>
    tpu.vector_store %arg5[%c0_11, %c0_12, %c0_13], %17 {strides = array<i32>} : memref<1x16x128xbf16, #tpu.memory_space<vmem>>, vector<1x16x128xbf16>,
    return
  }
  func.func @transform_0(%arg0: i32) -> (i32, i32, i32) {
    %c0_i32 = arith.constant 0 : i32
    %c0_i32_0 = arith.constant 0 : i32
    %c0_i32_1 = arith.constant 0 : i32
    return %arg0, %c0_i32, %c0_i32_0 : i32, i32, i32
  }
  func.func @transform_1(%arg0: i32) -> (i32, i32, i32) {
    %c0_i32 = arith.constant 0 : i32
    %c0_i32_0 = arith.constant 0 : i32
    %c0_i32_1 = arith.constant 0 : i32
    %c0_i32_2 = arith.constant 0 : i32
    return %c0_i32, %c0_i32_0, %c0_i32_1 : i32, i32, i32
  }
  func.func @transform_2(%arg0: i32) -> (i32, i32) {
    %c0_i32 = arith.constant 0 : i32
    %c0_i32_0 = arith.constant 0 : i32
    %c0_i32_1 = arith.constant 0 : i32
    return %c0_i32, %c0_i32_0 : i32, i32
  }
  func.func @transform_3(%arg0: i32) -> (i32, i32, i32) {
    %c0_i32 = arith.constant 0 : i32
    %c0_i32_0 = arith.constant 0 : i32
    %c0_i32_1 = arith.constant 0 : i32
    return %arg0, %c0_i32, %c0_i32_0 : i32, i32, i32
  }
  func.func @transform_4(%arg0: i32) -> (i32, i32, i32) {
    %c0_i32 = arith.constant 0 : i32
    %c0_i32_0 = arith.constant 0 : i32
    %c0_i32_1 = arith.constant 0 : i32
    return %arg0, %c0_i32, %c0_i32_0 : i32, i32, i32
  }
}

module attributes {stable_mosaic.version = 11 : i64} {
  func.func @_fused_conv_kernel(%arg0: i32, %arg1: memref<1x16x128xbf16, #tpu.memory_space<vmem>>, %arg2: memref<1x128xf32, #tpu.memory_space<vmem>>, %arg3: memref<1x128xf32, #tpu.memory_space<vmem>>, %arg4: memref<1x128x128xbf16, #tpu.memory_space<vmem>>, %arg5: memref<1x128xf32, #tpu.memory_space<vmem>>, %arg6: memref<1x16x128xf32, #tpu.memory_space<vmem>>) attributes {dimension_semantics = [#tpu.dimension_semantics<parallel>], iteration_bounds = array<i64: 2>, scalar_prefetch = 0 : i64, scratch_operands = 0 : i64, tpu.core_type = #tpu.core_type<tc>, window_params = [{transform_indices = @transform_0, window_bounds = array<i64: 1, 16, 128>}, {pipeline_mode = #tpu.pipeline_mode<synchronous>, transform_indices = @transform_1, window_bounds = array<i64: 1, 128>}, {pipeline_mode = #tpu.pipeline_mode<synchronous>, transform_indices = @transform_2, window_bounds = array<i64: 1, 128>}, {pipeline_mode = #tpu.pipeline_mode<synchronous>, transform_indices = @transform_3, window_bounds = array<i64: 1, 128, 128>}, {pipeline_mode = #tpu.pipeline_mode<synchronous>, transform_indices = @transform_4, window_bounds = array<i64: 1, 128>}, {transform_indices = @transform_5, window_bounds = array<i64: 1, 16, 128>}]} {
    %c0 = arith.constant 0 : index
    %c0_0 = arith.constant 0 : index
    %c0_1 = arith.constant 0 : index
    %0 = vector.load %arg1[%c0, %c0_0, %c0_1] : memref<1x16x128xbf16, #tpu.memory_space<vmem>>, vector<1x16x128xbf16>
    %1 = vector.shape_cast %0 : vector<1x16x128xbf16> to vector<16x128xbf16>
    %2 = arith.extf %1 : vector<16x128xbf16> to vector<16x128xf32>
    %c0_2 = arith.constant 0 : index
    %c0_3 = arith.constant 0 : index
    %3 = vector.load %arg2[%c0_2, %c0_3] : memref<1x128xf32, #tpu.memory_space<vmem>>, vector<1x128xf32>
    %4 = vector.broadcast %3 : vector<1x128xf32> to vector<16x128xf32>
    %5 = arith.mulf %2, %4 : vector<16x128xf32>
    %c0_4 = arith.constant 0 : index
    %c0_5 = arith.constant 0 : index
    %6 = vector.load %arg3[%c0_4, %c0_5] : memref<1x128xf32, #tpu.memory_space<vmem>>, vector<1x128xf32>
    %7 = vector.broadcast %6 : vector<1x128xf32> to vector<16x128xf32>
    %8 = arith.addf %5, %7 : vector<16x128xf32>
    %cst = arith.constant 0.000000e+00 : f32
    %9 = vector.broadcast %cst : f32 to vector<16x128xf32>
    %10 = arith.maximumf %8, %9 : vector<16x128xf32>
    %11 = arith.truncf %10 : vector<16x128xf32> to vector<16x128xbf16>
    %cst_6 = arith.constant 0.000000e+00 : f32
    %12 = vector.broadcast %cst_6 : f32 to vector<16x128xf32>
    %c0_7 = arith.constant 0 : index
    %c0_8 = arith.constant 0 : index
    %c0_9 = arith.constant 0 : index
    %13 = vector.load %arg4[%c0_7, %c0_8, %c0_9] : memref<1x128x128xbf16, #tpu.memory_space<vmem>>, vector<1x128x128xbf16>
    %14 = vector.shape_cast %13 : vector<1x128x128xbf16> to vector<128x128xbf16>
    %cst_10 = arith.constant dense<0.000000e+00> : vector<16x128xf32>
    %15 = tpu.matmul %11, %14, %cst_10 {dimension_numbers = #tpu.dot_dimension_numbers<[1], [0], [0], [1], [0, 0, 1, 1], [], []>} : vector<16x128xbf16>, vector<128x128xbf16>, vector<16x128xf32> -> vector<16x128xf32>
    %16 = arith.addf %12, %15 : vector<16x128xf32>
    %c0_11 = arith.constant 0 : index
    %c0_12 = arith.constant 0 : index
    %17 = vector.load %arg5[%c0_11, %c0_12] : memref<1x128xf32, #tpu.memory_space<vmem>>, vector<1x128xf32>
    %18 = vector.broadcast %17 : vector<1x128xf32> to vector<16x128xf32>
    %19 = arith.addf %16, %18 : vector<16x128xf32>
    %20 = vector.shape_cast %19 : vector<16x128xf32> to vector<1x16x128xf32>
    %c0_13 = arith.constant 0 : index
    %c0_14 = arith.constant 0 : index
    %c0_15 = arith.constant 0 : index
    %21 = vector.load %arg6[%c0_13, %c0_14, %c0_15] : memref<1x16x128xf32, #tpu.memory_space<vmem>>, vector<1x16x128xf32>
    tpu.vector_store %arg6[%c0_13, %c0_14, %c0_15], %20 {strides = array<i32>} : memref<1x16x128xf32, #tpu.memory_space<vmem>>, vector<1x16x128xf32>,
    return
  }
  func.func @transform_0(%arg0: i32) -> (i32, i32, i32) {
    %c0_i32 = arith.constant 0 : i32
    %c0_i32_0 = arith.constant 0 : i32
    %c0_i32_1 = arith.constant 0 : i32
    return %arg0, %c0_i32, %c0_i32_0 : i32, i32, i32
  }
  func.func @transform_1(%arg0: i32) -> (i32, i32) {
    %c0_i32 = arith.constant 0 : i32
    %c0_i32_0 = arith.constant 0 : i32
    %c0_i32_1 = arith.constant 0 : i32
    return %c0_i32, %c0_i32_0 : i32, i32
  }
  func.func @transform_2(%arg0: i32) -> (i32, i32) {
    %c0_i32 = arith.constant 0 : i32
    %c0_i32_0 = arith.constant 0 : i32
    %c0_i32_1 = arith.constant 0 : i32
    return %c0_i32, %c0_i32_0 : i32, i32
  }
  func.func @transform_3(%arg0: i32) -> (i32, i32, i32) {
    %c0_i32 = arith.constant 0 : i32
    %c0_i32_0 = arith.constant 0 : i32
    %c0_i32_1 = arith.constant 0 : i32
    %c0_i32_2 = arith.constant 0 : i32
    return %c0_i32, %c0_i32_0, %c0_i32_1 : i32, i32, i32
  }
  func.func @transform_4(%arg0: i32) -> (i32, i32) {
    %c0_i32 = arith.constant 0 : i32
    %c0_i32_0 = arith.constant 0 : i32
    %c0_i32_1 = arith.constant 0 : i32
    return %c0_i32, %c0_i32_0 : i32, i32
  }
  func.func @transform_5(%arg0: i32) -> (i32, i32, i32) {
    %c0_i32 = arith.constant 0 : i32
    %c0_i32_0 = arith.constant 0 : i32
    %c0_i32_1 = arith.constant 0 : i32
    return %arg0, %c0_i32, %c0_i32_0 : i32, i32, i32
  }
}

</mosaic_0001>

<bundles_post_ra>
// kernel: tile.88
= control target key start
LH: loop header
LB: loop body
LE: loop exit
PB: predicated region body
PF: predicated region fallthrough
CT: control target
= control target key end

     0   :  { %s28_s0 = inlined_call_operand.vmem [shape: f32[8], index: 0, kind: input, shape index: {}]   ;;  %s29_s1 = inlined_call_operand.vmem [shape: f32[16,8], index: 1, kind: output, shape index: {}]  }
   0x1   :  { %v4_v0 = vld [vmem:[%s28_s0] ss:$0 sm:$0xff] }
   0x2   :  { %5 = vst [vmem:[%s29_s1] sm:$0xff] %v4_v0 }
   0x3   :  { %8 = vst [vmem:[%s29_s1 + $0x8] sm:$0xff] %v4_v0 }

// kernel: tile.89
= control target key start
LH: loop header
LB: loop body
LE: loop exit
PB: predicated region body
PF: predicated region fallthrough
CT: control target
= control target key end

     0   :  { %s131_s10 = smov 120   ;;  %s132_s11 = smov 104   ;;  %vm3_vm0 = vcmask 64512   ;;  %vm9_vm1 = vcmask 1048512   ;;  %vm15_vm2 = vcmask 982912   ;;  %vm21_vm3 = vcmask 917312   ;;  %s207_s0 = inlined_call_operand.vmem [shape: f32[16,8], index: 0, kind: input, shape index: {}]   ;;  %s208_s1 = inlined_call_operand.vmem [shape: f32[1,128], index: 1, kind: output, shape index: {}]  }
   0x1   :  { %v101_v0 = vld [vmem:[%s207_s0 + $0xf] sm:$0x1]   ;;  %v103_v1 = vld [vmem:[%s207_s0 + $0xd] sm:$0x1]   ;;  %v105_v2 = vld [vmem:[%s207_s0 + $0xb] sm:$0x1]  }
   0x2   :  { %7 = vrot.lane.b32.xlu0 %v101_v0, %s131_s10  ;;  %19 = vrot.lane.b32.xlu1 %v103_v1, %s132_s11  ;;  %s133_s14 = smov 88   ;;  %v102_v3 = vld [vmem:[%s207_s0 + $0xe] sm:$0x1]   ;;  %v104_v4 = vld [vmem:[%s207_s0 + $0xc] sm:$0x1]   ;;  %s134_s19 = smov 112  }
   0x3   :  { %31 = vrot.lane.b32.xlu2 %v105_v2, %s133_s14  ;;  %s135_s20 = smov 96   ;;  %v106_v5 = vld [vmem:[%s207_s0 + $0xa] sm:$0x1]   ;;  %s136_s23 = smov 80   ;;  %v107_v6 = vld [vmem:[%s207_s0 + $0x9] sm:$0x1]  }
   0x4   :  { %v108_v7 = vld [vmem:[%s207_s0 + $0x8] sm:$0x1]   ;;  %s137_s28 = smov 72   ;;  %s138_s29 = smov 64   ;;  %v109_v8 = vld [vmem:[%s207_s0 + $0x7] sm:$0x1]  }
   0x5   :  { %s139_s3 = smov 56   ;;  %v110_v9 = vld [vmem:[%s207_s0 + $0x6] sm:$0x1]   ;;  %v111_v10 = vld [vmem:[%s207_s0 + $0x5] sm:$0x1]   ;;  %s140_s8 = smov 48  }
   0x6   :  { %s141_s9 = smov 40   ;;  %v112_v11 = vld [vmem:[%s207_s0 + $0x4] sm:$0x1]   ;;  %s142_s12 = smov 32   ;;  %v113_v12 = vld [vmem:[%s207_s0 + $0x3] sm:$0x1]  }
   0x7   :  { %v114_v13 = vld [vmem:[%s207_s0 + $0x2] sm:$0x1]   ;;  %s143_s17 = smov 24   ;;  %s144_s18 = smov 16   ;;  %v115_v14 = vld [vmem:[%s207_s0 + $0x1] sm:$0x1]  }
   0x8   :  { %s145_s21 = smov 8   ;;  %v2_v15 = vld [vmem:[%s207_s0] sm:$0x1]   ;;  %vm27_vm4 = vcmask 851712   ;;  %vm33_vm5 = vcmask 786112   ;;  %vm39_vm6 = vcmask 720512  }
   0x9   :  { %4 = vst.msk [vmem:[#allocation0] sm:$0x1] %vm3_vm0, %v2_v15   ;;  %vm45_vm7 = vcmask 654912   ;;  %vm51_vm8 = vcmask 589312   ;;  %vm57_vm9 = vcmask 523712   ;;  %vm63_vm10 = vcmask 458112  }
   0xa   :  { %13 = vrot.lane.b32.xlu0 %v102_v3, %s134_s19  ;;  %25 = vrot.lane.b32.xlu1 %v104_v4, %s135_s20  ;;  %vm69_vm11 = vcmask 392512   ;;  %vm75_vm12 = vcmask 326912   ;;  %vm81_vm13 = vcmask 261312   ;;  %vm87_vm14 = vcmask 195712  }
   0xb   :  { %37 = vrot.lane.b32.xlu2 %v106_v5, %s136_s23  ;;  %vm93_vm15 = vcmask 130112  }
  0x12   :  { %43 = vrot.lane.b32.xlu0 %v107_v6, %s137_s28  ;;  %49 = vrot.lane.b32.xlu1 %v108_v7, %s138_s29 }
  0x13   :  { %55 = vrot.lane.b32.xlu2 %v109_v8, %s139_s3 }
  0x1a   :  { %61 = vrot.lane.b32.xlu0 %v110_v9, %s140_s8  ;;  %67 = vrot.lane.b32.xlu1 %v111_v10, %s141_s9 }
  0x1b   :  { %73 = vrot.lane.b32.xlu2 %v112_v11, %s142_s12 }
  0x22   :  { %79 = vrot.lane.b32.xlu0 %v113_v12, %s143_s17  ;;  %85 = vrot.lane.b32.xlu1 %v114_v13, %s144_s18 }
  0x23   :  { %91 = vrot.lane.b32.xlu2 %v115_v14, %s145_s21 }
  0x5d   :  { %v32_v16 = vpop.permute.xlu2 %31  }
  0x65   :  { %v38_v17 = vpop.permute.xlu2 %37  }
  0x6d   :  { %v56_v18 = vpop.permute.xlu2 %55  }
  0x74   :  { %v8_v19 = vpop.permute.xlu0 %7   ;;  %v20_v20 = vpop.permute.xlu1 %19  }
  0x75   :  { %10 = vst.msk [vmem:[#allocation0] sm:$0x1] %vm9_vm1, %v8_v19   ;;  %v74_v21 = vpop.permute.xlu2 %73  }
  0x7c   :  { %v14_v22 = vpop.permute.xlu0 %13   ;;  %v26_v23 = vpop.permute.xlu1 %25  }
  0x7d   :  { %16 = vst.msk [vmem:[#allocation0] sm:$0x1] %vm15_vm2, %v14_v22   ;;  %v92_v24 = vpop.permute.xlu2 %91  }
  0x7e   :  { %22 = vst.msk [vmem:[#allocation0] sm:$0x1] %vm21_vm3, %v20_v20  }
  0x7f   :  { %28 = vst.msk [vmem:[#allocation0] sm:$0x1] %vm27_vm4, %v26_v23  }
  0x80   :  { %34 = vst.msk [vmem:[#allocation0] sm:$0x1] %vm33_vm5, %v32_v16  }
  0x81   :  { %40 = vst.msk [vmem:[#allocation0] sm:$0x1] %vm39_vm6, %v38_v17  }
  0x84   :  { %v44_v25 = vpop.permute.xlu0 %43   ;;  %v50_v26 = vpop.permute.xlu1 %49  }
  0x85   :  { %46 = vst.msk [vmem:[#allocation0] sm:$0x1] %vm45_vm7, %v44_v25  }
  0x86   :  { %52 = vst.msk [vmem:[#allocation0] sm:$0x1] %vm51_vm8, %v50_v26  }
  0x87   :  { %58 = vst.msk [vmem:[#allocation0] sm:$0x1] %vm57_vm9, %v56_v18  }
  0x8c   :  { %v62_v27 = vpop.permute.xlu0 %61   ;;  %v68_v28 = vpop.permute.xlu1 %67  }
  0x8d   :  { %64 = vst.msk [vmem:[#allocation0] sm:$0x1] %vm63_vm10, %v62_v27  }
  0x8e   :  { %70 = vst.msk [vmem:[#allocation0] sm:$0x1] %vm69_vm11, %v68_v28  }
  0x8f   :  { %76 = vst.msk [vmem:[#allocation0] sm:$0x1] %vm75_vm12, %v74_v21  }
  0x94   :  { %v80_v29 = vpop.permute.xlu0 %79   ;;  %v86_v30 = vpop.permute.xlu1 %85  }
  0x95   :  { %82 = vst.msk [vmem:[#allocation0] sm:$0x1] %vm81_vm13, %v80_v29  }
  0x96   :  { %88 = vst.msk [vmem:[#allocation0] sm:$0x1] %vm87_vm14, %v86_v30  }
  0x97   :  { %94 = vst.msk [vmem:[#allocation0] sm:$0x1] %vm93_vm15, %v92_v24  }
  0x9e   :  { %v97_v31 = vld [vmem:[#allocation0] sm:$0x1] }
  0x9f   :  { %100 = vst [vmem:[%s208_s1] sm:$0x1] %v97_v31 }

// kernel: stresnet_forward.9
= control target key start
LH: loop header
LB: loop body
LE: loop exit
PB: predicated region body
PF: predicated region fallthrough
CT: control target
= control target key end

     0   :  { %s599_s12 = smov 0   ;;  %s685_s0 = inlined_call_operand.vmem [shape: bf16[2,16,64], index: 0, kind: input, shape index: {}]   ;;  %s686_s1 = inlined_call_operand.vmem [shape: bf16[3,64,128], index: 1, kind: input, shape index: {}]   ;;  %s687_s2 = inlined_call_operand.vmem [shape: f32[1,128], index: 2, kind: input, shape index: {}]   ;;  %s688_s3 = inlined_call_operand.vmem [shape: bf16[2,16,128], index: 3, kind: output, shape index: {}]  }
   0x1 LB: > { %s458_s13 = sadd.s32 4294967295, %s576_s12   ;;  %p462_p0 = scmp.ge.s32.totalorder %s576_s12, 1  ;;  %s576_s12 = sphi %s599_s12, %s13_s12  }
   0x2   : > { %p137_p1 = scmp.lt.s32.totalorder %s576_s12, 3 }
   0x4   : > { %p138_p2 = pnand %p462_p0, %p137_p1 }
   0x5   : > { %p161_p3 = scmp.lt.s32.totalorder (!%p138_p2), %s458_s13, 1 }
   0x6   : > { %141 = sbr.rel (%p138_p2) target bundleno = 187 (0xbb), region = 32 }
   0xb   : > { %v546_v0 = vld [vmem:[%s686_s1 + $0x18] sm:$0xff]  ;;  %vm174_vm0 = vcmask 519168   ;;  %v578_v3 = vmov 0   ;;  %v545_v4 = vld [vmem:[%s686_s1 + $0x10] sm:$0xff]  ;;  %s694_s13 = smov (!%p161_p3, %s458_s13), 1  ;;  %v544_v7 = vld [vmem:[%s686_s1 + $0x8] sm:$0xff] }
   0xc   : > { %v554_v1 = vld [vmem:[%s686_s1 + $0x58] sm:$0xff]  ;;  %175 = vst.msk [vmem:[#allocation2] sm:$0xf] %vm174_vm0, %v578_v3  ;;  %327 = vmatpush.bf16.msra.mxu1 %v546_v0  ;;  %v553_v5 = vld [vmem:[%s686_s1 + $0x50] sm:$0xff]  ;;  %v552_v8 = vld [vmem:[%s686_s1 + $0x48] sm:$0xff]  ;;  %s540_s30 = sshll.u32 %s694_s13, 3 }
   0xd   : > { %v550_v2 = vld [vmem:[%s686_s1 + $0x38] sm:$0xff]  ;;  %381 = vmatpush.bf16.msra.mxu2 %v554_v1  ;;  %176 = vst.msk [vmem:[#allocation2 + $0x4] sm:$0xf] %vm174_vm0, %v578_v3  ;;  %v549_v6 = vld [vmem:[%s686_s1 + $0x30] sm:$0xff]  ;;  %vm179_vm1 = vsmask.f32 256  ;;  %s165_s6 = scalar_lea.vmem %s685_s0, %s540_s30  ;;  %s170_s21 = scalar_lea.vmem %s688_s3, %s540_s30 }
   0xe   : > { %287 = vmatpush.bf16.msra.mxu0 %v550_v2  ;;  %vm177_vm2 = vcmask 516096   ;;  %vm180_vm3 = vsmask.f32 4368  ;;  %v172_v9 = vld [vmem:[%s165_s6] sm:$0xf]  ;;  %v548_v11 = vld [vmem:[%s686_s1 + $0x28] sm:$0xff] }
   0xf   : > { %178 = vst.msk [vmem:[#allocation2 + $0x8] sm:$0x1] %vm177_vm2, %v578_v3  ;;  %v173_v10 = vld [vmem:[%s165_s6 + $0x4] sm:$0xf]  ;;  %vm203_vm4 = vsmask.f32 7938  ;;  %vm646_vm5 = vmor %vm179_vm1, %vm180_vm3 }
  0x10   : > { %328 = vmatpush.bf16.msra.mxu1 %v545_v4  ;;  %v183_v12 = vshrl.u32 %v172_v9, 16  ;;  %v186_v13 = vshll.u32 %v172_v9, 16  ;;  %v191_v14 = vshrl.u32 %v173_v10, 16  ;;  %v194_v15 = vshll.u32 %v173_v10, 16  ;;  %v543_v17 = vld [vmem:[%s686_s1] sm:$0xff]  ;;  %vm654_vm6 = vmand %vm174_vm0, %vm203_vm4 }
  0x11   : > { %382 = vmatpush.bf16.msra.mxu2 %v553_v5  ;;  %v551_v22 = vld [vmem:[%s686_s1 + $0x40] sm:$0xff]  ;;  %vm210_vm7 = vmand %vm177_vm2, %vm179_vm1  ;;  %vm279_vm8 = vcmask 523264   ;;  %vm346_vm9 = vcmask 1046528   ;;  %vm242_vm10 = vsmask.f32 7424 }
  0x12   : > { %288 = vmatpush.bf16.msra.mxu0 %v549_v6  ;;  %v185_v18 = vrot.slane %v183_v12, 7  ;;  %v193_v19 = vrot.slane %v191_v14, 7  ;;  %v547_v26 = vld [vmem:[%s686_s1 + $0x20] sm:$0xff] }
  0x13   : > { %v205_v21 = vld [vmem:[#allocation2] sm:$0xf] }
  0x14   : > { %329 = vmatpush.bf16.msra.mxu1 %v544_v7  ;;  %v188_v23 = vor.u32 %v186_v13, %v185_v18  ;;  %v189_v24 = vrot.slane %v185_v18, 4  ;;  %v196_v25 = vor.u32 %v194_v15, %v193_v19  ;;  %v198_v27 = vrot.slane %v193_v19, 4  ;;  %v569_v53 = vld [vmem:[%s687_s2] ss:$0 sm:$0xff] }
  0x15   : > { %383 = vmatpush.bf16.msra.mxu2 %v552_v8 }
  0x16   : > { %289 = vmatpush.bf16.msra.mxu0 %v548_v11  ;;  %v211_v28 = vld [vmem:[#allocation2 + $0x8] sm:$0x1]  ;;  %v197_v29 = vsel %vm646_vm5, %v189_v24, %v196_v25  ;;  %v206_v30 = vsel %vm654_vm6, %v188_v23, %v205_v21 }
  0x17   : > { %v212_v31 = vsel %vm210_vm7, %v198_v27, %v211_v28  ;;  %207 = vst [vmem:[#allocation2] sm:$0xf] %v206_v30 }
  0x18   : > { %330 = vmatpush.bf16.msra.mxu1 %v543_v17  ;;  %208 = vst.msk [vmem:[#allocation2 + $0x4] sm:$0xf] %vm174_vm0, %v197_v29 }
  0x19   : > { %384 = vmatpush.bf16.msra.mxu2 %v551_v22  ;;  %213 = vst [vmem:[#allocation2 + $0x8] sm:$0x1] %v212_v31 }
  0x1a   : > { %290 = vmatpush.bf16.msra.mxu0 %v547_v26 }
  0x1f   : > { %v542_v32 = vld [vmem:[#allocation2] sm:$0xff] }
  0x20   : > { %v216_v33 = vld [vmem:[#allocation2 + $0x8] sm:$0x1]  ;;  %512 = vmatmul.msk.bf16.vlgmr.msra.gmra.mxu1 %vm279_vm8, %v542_v32  ;;  %v244_v35 = vshrl.u32 %v542_v32, 16  ;;  %v246_v36 = vshll.u32 %v542_v32, 16  ;;  %v347_v38 = vrot.slane %v542_v32, 1 }
  0x21   : > { %v239_v34 = vunpack.c.l.b16 %v216_v33 }
  0x22   : > { %v248_v39 = vrot.slane %v246_v36, 1 }
  0x23   : > { %v241_v37 = vpack.c.b16 %v239_v34, %v239_v34 }
  0x24   : > { %v249_v41 = vor.u32 %v248_v39, %v244_v35 }
  0x25   : > { %v348_v40 = vrot.slane %v241_v37, 1  ;;  %v251_v42 = vshll.u32 %v241_v37, 16 }
  0x27   : > { %v349_v43 = vsel %vm346_vm9, %v347_v38, %v348_v40  ;;  %v253_v44 = vrot.slane %v251_v42, 1 }
  0x28   : > { %537 = vmatmul.msk.bf16.vlgmr.msra.gmra.mxu2 %vm279_vm8, %v349_v43 }
  0x29   : > { %v254_v45 = vsel %vm242_vm10, %v249_v41, %v253_v44 }
  0x2a   : > { %495 = vmatmul.msk.bf16.vlgmr.msra.gmra.mxu0 %vm279_vm8, %v254_v45 }
  0x9d   : > { %v332_v46 = vpop.f32.mrf.mxu1 }
  0xa5   : > { %v334_v51 = vpop.f32.mrf.mxu1 }
  0xa7   : > { %v292_v47 = vpop.f32.mrf.mxu0 }
  0xa8   : > { %v333_v49 = vadd.f32 %v332_v46, %v292_v47 }
  0xab   : > { %v386_v48 = vpop.f32.mrf.mxu2 }
  0xac   : > { %v391_v52 = vadd.f32 %v386_v48, %v333_v49 }
  0xae   : > { %v397_v57 = vadd.f32 %v569_v53, %v391_v52 }
  0xaf   : > { %v294_v50 = vpop.f32.mrf.mxu0 }
  0xb0   : > { %v335_v54 = vadd.f32 %v334_v51, %v294_v50 }
  0xb3   : > { %v388_v55 = vpop.f32.mrf.mxu2 }
  0xb4   : > { %v392_v56 = vadd.f32 %v388_v55, %v335_v54 }
  0xb6   : > { %v398_v58 = vadd.f32 %v569_v53, %v392_v56 }
  0xb8   : > { %v558_v59 = vpack.c.bf16 %v398_v58, %v397_v57 }
  0xba   : > { %559 = vst [vmem:[%s170_s21] sm:$0xff] %v558_v59  }
  0xbb PF: > { %s13_s12 = sadd.s32 1, %s576_s12  }
  0xbc   : > { %p10_p4 = scmp.ge.s32.totalorder %s13_s12, 4  }
  0xbe   :  { %12 = sbr.rel (!%p10_p4) target bundleno = 1 (0x1), region = 64 }

// kernel: stresnet_forward.11
= control target key start
LH: loop header
LB: loop body
LE: loop exit
PB: predicated region body
PF: predicated region fallthrough
CT: control target
= control target key end

     0   :  { %s809_s15 = smov 0   ;;  %s928_s0 = inlined_call_operand.vmem [shape: bf16[2,16,128], index: 0, kind: input, shape index: {}]   ;;  %s929_s1 = inlined_call_operand.vmem [shape: f32[1,128], index: 1, kind: input, shape index: {}]   ;;  %s930_s2 = inlined_call_operand.vmem [shape: f32[1,128], index: 2, kind: input, shape index: {}]   ;;  %s931_s3 = inlined_call_operand.vmem [shape: bf16[3,128,128], index: 3, kind: input, shape index: {}]   ;;  %s932_s4 = inlined_call_operand.vmem [shape: bf16[2,16,128], index: 4, kind: output, shape index: {}]  }
   0x1 LB: > { %s585_s16 = sadd.s32 4294967295, %s781_s15   ;;  %p589_p0 = scmp.ge.s32.totalorder %s781_s15, 1  ;;  %s781_s15 = sphi %s809_s15, %s14_s15  }
   0x2   : > { %p162_p1 = scmp.lt.s32.totalorder %s781_s15, 3 }
   0x4   : > { %p163_p2 = pnand %p589_p0, %p162_p1 }
   0x5   : > { %p188_p3 = scmp.lt.s32.totalorder (!%p163_p2), %s585_s16, 1 }
   0x6   : > { %166 = sbr.rel (%p163_p2) target bundleno = 194 (0xc2), region = 36 }
   0xb   : > { %v738_v0 = vld [vmem:[%s931_s3 + $0x38] sm:$0xff]  ;;  %v783_v3 = vmov 0   ;;  %v737_v4 = vld [vmem:[%s931_s3 + $0x30] sm:$0xff]  ;;  %s938_s16 = smov (!%p188_p3, %s585_s16), 1  ;;  %v736_v7 = vld [vmem:[%s931_s3 + $0x28] sm:$0xff]  ;;  %vm245_vm2 = vcmask 1043456  }
   0xc   : > { %v754_v1 = vld [vmem:[%s931_s3 + $0xb8] sm:$0xff]  ;;  %219 = vst [vmem:[#allocation2] sm:$0xf] %v783_v3  ;;  %426 = vmatpush.bf16.msra.mxu1 %v738_v0  ;;  %v753_v5 = vld [vmem:[%s931_s3 + $0xb0] sm:$0xff]  ;;  %s728_s29 = sshll.u32 %s938_s16, 3  ;;  %v752_v8 = vld [vmem:[%s931_s3 + $0xa8] sm:$0xff] }
   0xd   : > { %v746_v2 = vld [vmem:[%s931_s3 + $0x78] sm:$0xff]  ;;  %510 = vmatpush.bf16.msra.mxu2 %v754_v1  ;;  %220 = vst [vmem:[#allocation2 + $0x4] sm:$0xf] %v783_v3  ;;  %v745_v6 = vld [vmem:[%s931_s3 + $0x70] sm:$0xff]  ;;  %s192_s6 = scalar_lea.vmem %s928_s0, %s728_s29  ;;  %v744_v9 = vld [vmem:[%s931_s3 + $0x68] sm:$0xff]  ;;  %vm252_vm4 = vcmask 1040384   ;;  %s197_s28 = scalar_lea.vmem %s932_s4, %s728_s29 }
   0xe   : > { %363 = vmatpush.bf16.msra.mxu0 %v746_v2  ;;  %221 = vst [vmem:[#allocation2 + $0x8] sm:$0x1] %v783_v3  ;;  %v756_v10 = vld [vmem:[%s192_s6] sm:$0xff]   ;;  %v734_v22 = vld [vmem:[%s931_s3 + $0x18] sm:$0xff]  ;;  %vm222_vm0 = vsmask.f32 256 }
   0xf   : > { %v757_v11 = vunpack.c.l.bf16 %v756_v10  ;;  %v758_v12 = vunpack.c.h.bf16 %v756_v10  ;;  %v773_v13 = vld [vmem:[%s929_s1] ss:$0 sm:$0xff]  ;;  %v750_v23 = vld [vmem:[%s931_s3 + $0x98] sm:$0xff]  ;;  %vm223_vm1 = vsmask.f32 4368  ;;  %v733_v29 = vld [vmem:[%s931_s3 + $0x10] sm:$0xff] }
  0x10   : > { %427 = vmatpush.bf16.msra.mxu1 %v737_v4  ;;  %v774_v14 = vld [vmem:[%s930_s2] ss:$0 sm:$0xff]  ;;  %v742_v26 = vld [vmem:[%s931_s3 + $0x58] sm:$0xff]  ;;  %vm246_vm3 = vsmask.f32 7938  ;;  %v749_v30 = vld [vmem:[%s931_s3 + $0x90] sm:$0xff] }
  0x11   : > { %511 = vmatpush.bf16.msra.mxu2 %v753_v5  ;;  %v735_v15 = vld [vmem:[%s931_s3 + $0x20] sm:$0xff]  ;;  %v207_v17 = vmul.f32 %v773_v13, %v757_v11  ;;  %v208_v18 = vmul.f32 %v773_v13, %v758_v12  ;;  %v741_v35 = vld [vmem:[%s931_s3 + $0x50] sm:$0xff]  ;;  %vm886_vm5 = vmor %vm222_vm0, %vm223_vm1  ;;  %vm457_vm8 = vcmask 1046528   ;;  %vm301_vm9 = vsmask.f32 7424 }
  0x12   : > { %364 = vmatpush.bf16.msra.mxu0 %v745_v6  ;;  %v751_v16 = vld [vmem:[%s931_s3 + $0xa0] sm:$0xff]  ;;  %vm892_vm6 = vmand %vm245_vm2, %vm246_vm3  ;;  %v732_v42 = vld [vmem:[%s931_s3 + $0x8] sm:$0xff] }
  0x13   : > { %v743_v19 = vld [vmem:[%s931_s3 + $0x60] sm:$0xff]  ;;  %v213_v20 = vadd.f32 %v774_v14, %v207_v17  ;;  %v214_v21 = vadd.f32 %v774_v14, %v208_v18  ;;  %vm253_vm7 = vmand %vm252_vm4, %vm222_vm0  ;;  %v748_v43 = vld [vmem:[%s931_s3 + $0x88] sm:$0xff] }
  0x14   : > { %428 = vmatpush.bf16.msra.mxu1 %v736_v7  ;;  %v248_v40 = vld [vmem:[#allocation2] sm:$0xf]  ;;  %v740_v48 = vld [vmem:[%s931_s3 + $0x48] sm:$0xff] }
  0x15   : > { %512 = vmatpush.bf16.msra.mxu2 %v752_v8  ;;  %v215_v24 = vmax.f32 %v213_v20, 0.0  ;;  %v216_v25 = vmax.f32 %v214_v21, 0.0  ;;  %v254_v41 = vld [vmem:[#allocation2 + $0x8] sm:$0x1]  ;;  %v731_v52 = vld [vmem:[%s931_s3] sm:$0xff] }
  0x16   : > { %365 = vmatpush.bf16.msra.mxu0 %v744_v9  ;;  %v747_v53 = vld [vmem:[%s931_s3 + $0x80] sm:$0xff] }
  0x17   : > { %v217_v27 = vpack.c.bf16 %v215_v24, %v215_v24  ;;  %v218_v28 = vpack.c.bf16 %v216_v25, %v216_v25  ;;  %v739_v54 = vld [vmem:[%s931_s3 + $0x40] sm:$0xff] }
  0x18   : > { %429 = vmatpush.bf16.msra.mxu1 %v735_v15 }
  0x19   : > { %513 = vmatpush.bf16.msra.mxu2 %v751_v16  ;;  %v226_v31 = vshrl.u32 %v217_v27, 16  ;;  %v229_v32 = vshll.u32 %v217_v27, 16  ;;  %v234_v33 = vshrl.u32 %v218_v28, 16  ;;  %v237_v34 = vshll.u32 %v218_v28, 16 }
  0x1a   : > { %366 = vmatpush.bf16.msra.mxu0 %v743_v19 }
  0x1b   : > { %v228_v37 = vrot.slane %v226_v31, 7  ;;  %v236_v38 = vrot.slane %v234_v33, 7 }
  0x1c   : > { %430 = vmatpush.bf16.msra.mxu1 %v734_v22 }
  0x1d   : > { %514 = vmatpush.bf16.msra.mxu2 %v750_v23  ;;  %v231_v44 = vor.u32 %v229_v32, %v228_v37  ;;  %v232_v45 = vrot.slane %v228_v37, 4  ;;  %v239_v46 = vor.u32 %v237_v34, %v236_v38  ;;  %v241_v47 = vrot.slane %v236_v38, 4 }
  0x1e   : > { %367 = vmatpush.bf16.msra.mxu0 %v742_v26 }
  0x1f   : > { %v240_v49 = vsel %vm886_vm5, %v232_v45, %v239_v46  ;;  %v249_v50 = vsel %vm892_vm6, %v231_v44, %v248_v40  ;;  %v255_v51 = vsel %vm253_vm7, %v241_v47, %v254_v41 }
  0x20   : > { %431 = vmatpush.bf16.msra.mxu1 %v733_v29  ;;  %250 = vst [vmem:[#allocation2] sm:$0xf] %v249_v50 }
  0x21   : > { %515 = vmatpush.bf16.msra.mxu2 %v749_v30  ;;  %251 = vst [vmem:[#allocation2 + $0x4] sm:$0xf] %v240_v49 }
  0x22   : > { %368 = vmatpush.bf16.msra.mxu0 %v741_v35  ;;  %256 = vst [vmem:[#allocation2 + $0x8] sm:$0x1] %v255_v51 }
  0x24   : > { %432 = vmatpush.bf16.msra.mxu1 %v732_v42 }
  0x25   : > { %516 = vmatpush.bf16.msra.mxu2 %v748_v43 }
  0x26   : > { %369 = vmatpush.bf16.msra.mxu0 %v740_v48 }
  0x28   : > { %433 = vmatpush.bf16.msra.mxu1 %v731_v52  ;;  %v730_v55 = vld [vmem:[#allocation2] sm:$0xff] }
  0x29   : > { %517 = vmatpush.bf16.msra.mxu2 %v747_v53  ;;  %v259_v56 = vld [vmem:[#allocation2 + $0x8] sm:$0x1]  ;;  %v303_v58 = vshrl.u32 %v730_v55, 16  ;;  %v305_v59 = vshll.u32 %v730_v55, 16  ;;  %v458_v61 = vrot.slane %v730_v55, 1 }
  0x2a   : > { %370 = vmatpush.bf16.msra.mxu0 %v739_v54  ;;  %v298_v57 = vunpack.c.l.b16 %v259_v56 }
  0x2b   : > { %434 = vmatmul.bf16.vlgmr.msra.gmra.mxu1 %v730_v55  ;;  %v307_v62 = vrot.slane %v305_v59, 1 }
  0x2c   : > { %v300_v60 = vpack.c.b16 %v298_v57, %v298_v57 }
  0x2d   : > { %v308_v0 = vor.u32 %v307_v62, %v303_v58 }
  0x2e   : > { %v459_v63 = vrot.slane %v300_v60, 1  ;;  %v310_v1 = vshll.u32 %v300_v60, 16 }
  0x30   : > { %v460_v2 = vsel %vm457_vm8, %v458_v61, %v459_v63  ;;  %v312_v3 = vrot.slane %v310_v1, 1 }
  0x31   : > { %518 = vmatmul.bf16.vlgmr.msra.gmra.mxu2 %v460_v2 }
  0x32   : > { %v313_v4 = vsel %vm301_vm9, %v308_v0, %v312_v3 }
  0x33   : > { %371 = vmatmul.bf16.vlgmr.msra.gmra.mxu0 %v313_v4 }
  0xa8   : > { %v435_v5 = vpop.f32.mrf.mxu1 }
  0xb0   : > { %v372_v6 = vpop.f32.mrf.mxu0  ;;  %v437_v10 = vpop.f32.mrf.mxu1 }
  0xb1   : > { %v436_v9 = vadd.f32 %v435_v5, %v372_v6 }
  0xb4   : > { %v519_v7 = vpop.f32.mrf.mxu2 }
  0xb5   : > { %v524_v13 = vadd.f32 %v519_v7, %v436_v9 }
  0xb8   : > { %v374_v8 = vpop.f32.mrf.mxu0 }
  0xb9   : > { %v438_v11 = vadd.f32 %v437_v10, %v374_v8 }
  0xbc   : > { %v521_v12 = vpop.f32.mrf.mxu2 }
  0xbd   : > { %v525_v14 = vadd.f32 %v521_v12, %v438_v11 }
  0xbf   : > { %v762_v15 = vpack.c.bf16 %v525_v14, %v524_v13 }
  0xc1   : > { %763 = vst [vmem:[%s197_s28] sm:$0xff] %v762_v15  }
  0xc2 PF: > { %s14_s15 = sadd.s32 1, %s781_s15  }
  0xc3   : > { %p11_p4 = scmp.ge.s32.totalorder %s14_s15, 4  }
  0xc5   :  { %13 = sbr.rel (!%p11_p4) target bundleno = 1 (0x1), region = 68 }

// kernel: stresnet_forward.12
= control target key start
LH: loop header
LB: loop body
LE: loop exit
PB: predicated region body
PF: predicated region fallthrough
CT: control target
= control target key end

     0   :  { %s925_s21 = smov 0   ;;  %s1048_s0 = inlined_call_operand.vmem [shape: bf16[2,16,128], index: 0, kind: input, shape index: {}]   ;;  %s1049_s1 = inlined_call_operand.vmem [shape: f32[1,128], index: 1, kind: input, shape index: {}]   ;;  %s1050_s2 = inlined_call_operand.vmem [shape: f32[1,128], index: 2, kind: input, shape index: {}]   ;;  %s1051_s3 = inlined_call_operand.vmem [shape: bf16[3,128,128], index: 3, kind: input, shape index: {}]   ;;  %s1052_s4 = inlined_call_operand.vmem [shape: f32[1,128], index: 4, kind: input, shape index: {}]   ;;  %s1053_s5 = inlined_call_operand.vmem [shape: bf16[2,16,128], index: 5, kind: input, shape index: {}]   ;;  %s1054_s6 = inlined_call_operand.vmem [shape: bf16[2,16,128], index: 6, kind: output, shape index: {}]  }
   0x1 LB: > { %s683_s22 = sadd.s32 4294967295, %s887_s21   ;;  %p687_p0 = scmp.ge.s32.totalorder %s887_s21, 1  ;;  %s887_s21 = sphi %s925_s21, %s16_s21  }
   0x2   : > { %p222_p1 = scmp.lt.s32.totalorder %s887_s21, 3 }
   0x4   : > { %p223_p2 = pnand %p687_p0, %p222_p1 }
   0x5   : > { %p257_p3 = scmp.lt.s32.totalorder (!%p223_p2), %s683_s22, 1 }
   0x6   : > { %226 = sbr.rel (%p223_p2) target bundleno = 198 (0xc6), region = 44 }
   0xb   : > { %v839_v0 = vld [vmem:[%s1051_s3 + $0x38] sm:$0xff]  ;;  %v889_v3 = vmov 0   ;;  %v838_v4 = vld [vmem:[%s1051_s3 + $0x30] sm:$0xff]  ;;  %s1060_s22 = smov (!%p257_p3, %s683_s22), 1  ;;  %v837_v7 = vld [vmem:[%s1051_s3 + $0x28] sm:$0xff]  ;;  %vm319_vm2 = vcmask 1043456  }
   0xc   : > { %v855_v1 = vld [vmem:[%s1051_s3 + $0xb8] sm:$0xff]  ;;  %293 = vst [vmem:[#allocation2] sm:$0xf] %v889_v3  ;;  %500 = vmatpush.bf16.msra.mxu1 %v839_v0  ;;  %v854_v5 = vld [vmem:[%s1051_s3 + $0xb0] sm:$0xff]  ;;  %s951_s11 = sshll.u32 %s1060_s22, 3  ;;  %v853_v8 = vld [vmem:[%s1051_s3 + $0xa8] sm:$0xff] }
   0xd   : > { %v847_v2 = vld [vmem:[%s1051_s3 + $0x78] sm:$0xff]  ;;  %584 = vmatpush.bf16.msra.mxu2 %v855_v1  ;;  %294 = vst [vmem:[#allocation2 + $0x4] sm:$0xf] %v889_v3  ;;  %v846_v6 = vld [vmem:[%s1051_s3 + $0x70] sm:$0xff]  ;;  %s261_s14 = scalar_lea.vmem %s1048_s0, %s951_s11  ;;  %v845_v9 = vld [vmem:[%s1051_s3 + $0x68] sm:$0xff]  ;;  %vm326_vm4 = vcmask 1040384   ;;  %s266_s13 = scalar_lea.vmem %s1053_s5, %s951_s11 }
   0xe   : > { %437 = vmatpush.bf16.msra.mxu0 %v847_v2  ;;  %295 = vst [vmem:[#allocation2 + $0x8] sm:$0x1] %v889_v3  ;;  %v857_v10 = vld [vmem:[%s261_s14] sm:$0xff]   ;;  %v835_v22 = vld [vmem:[%s1051_s3 + $0x18] sm:$0xff]  ;;  %vm296_vm0 = vsmask.f32 256  ;;  %s271_s18 = scalar_lea.vmem %s1054_s6, %s951_s11 }
   0xf   : > { %v858_v11 = vunpack.c.l.bf16 %v857_v10  ;;  %v859_v12 = vunpack.c.h.bf16 %v857_v10  ;;  %v878_v13 = vld [vmem:[%s1049_s1] ss:$0 sm:$0xff]  ;;  %v851_v23 = vld [vmem:[%s1051_s3 + $0x98] sm:$0xff]  ;;  %vm297_vm1 = vsmask.f32 4368  ;;  %v834_v29 = vld [vmem:[%s1051_s3 + $0x10] sm:$0xff] }
  0x10   : > { %501 = vmatpush.bf16.msra.mxu1 %v838_v4  ;;  %v879_v14 = vld [vmem:[%s1050_s2] ss:$0 sm:$0xff]  ;;  %v843_v26 = vld [vmem:[%s1051_s3 + $0x58] sm:$0xff]  ;;  %vm320_vm3 = vsmask.f32 7938  ;;  %v850_v30 = vld [vmem:[%s1051_s3 + $0x90] sm:$0xff] }
  0x11   : > { %585 = vmatpush.bf16.msra.mxu2 %v854_v5  ;;  %v836_v15 = vld [vmem:[%s1051_s3 + $0x20] sm:$0xff]  ;;  %v281_v17 = vmul.f32 %v878_v13, %v858_v11  ;;  %v282_v18 = vmul.f32 %v878_v13, %v859_v12  ;;  %v842_v35 = vld [vmem:[%s1051_s3 + $0x50] sm:$0xff]  ;;  %vm1000_vm5 = vmor %vm296_vm0, %vm297_vm1  ;;  %vm531_vm8 = vcmask 1046528   ;;  %vm375_vm9 = vsmask.f32 7424 }
  0x12   : > { %438 = vmatpush.bf16.msra.mxu0 %v846_v6  ;;  %v852_v16 = vld [vmem:[%s1051_s3 + $0xa0] sm:$0xff]  ;;  %vm1006_vm6 = vmand %vm319_vm2, %vm320_vm3  ;;  %v833_v42 = vld [vmem:[%s1051_s3 + $0x8] sm:$0xff] }
  0x13   : > { %v844_v19 = vld [vmem:[%s1051_s3 + $0x60] sm:$0xff]  ;;  %v287_v20 = vadd.f32 %v879_v14, %v281_v17  ;;  %v288_v21 = vadd.f32 %v879_v14, %v282_v18  ;;  %vm327_vm7 = vmand %vm326_vm4, %vm296_vm0  ;;  %v849_v43 = vld [vmem:[%s1051_s3 + $0x88] sm:$0xff] }
  0x14   : > { %502 = vmatpush.bf16.msra.mxu1 %v837_v7  ;;  %v322_v40 = vld [vmem:[#allocation2] sm:$0xf]  ;;  %v841_v48 = vld [vmem:[%s1051_s3 + $0x48] sm:$0xff] }
  0x15   : > { %586 = vmatpush.bf16.msra.mxu2 %v853_v8  ;;  %v289_v24 = vmax.f32 %v287_v20, 0.0  ;;  %v290_v25 = vmax.f32 %v288_v21, 0.0  ;;  %v328_v41 = vld [vmem:[#allocation2 + $0x8] sm:$0x1]  ;;  %v832_v52 = vld [vmem:[%s1051_s3] sm:$0xff] }
  0x16   : > { %439 = vmatpush.bf16.msra.mxu0 %v845_v9  ;;  %v848_v53 = vld [vmem:[%s1051_s3 + $0x80] sm:$0xff] }
  0x17   : > { %v291_v27 = vpack.c.bf16 %v289_v24, %v289_v24  ;;  %v292_v28 = vpack.c.bf16 %v290_v25, %v290_v25  ;;  %v840_v54 = vld [vmem:[%s1051_s3 + $0x40] sm:$0xff] }
  0x18   : > { %503 = vmatpush.bf16.msra.mxu1 %v836_v15  ;;  %v880_v11 = vld [vmem:[%s1052_s4] ss:$0 sm:$0xff] }
  0x19   : > { %587 = vmatpush.bf16.msra.mxu2 %v852_v16  ;;  %v300_v31 = vshrl.u32 %v291_v27, 16  ;;  %v303_v32 = vshll.u32 %v291_v27, 16  ;;  %v308_v33 = vshrl.u32 %v292_v28, 16  ;;  %v311_v34 = vshll.u32 %v292_v28, 16  ;;  %v861_v13 = vld [vmem:[%s266_s13] sm:$0xff]  }
  0x1a   : > { %440 = vmatpush.bf16.msra.mxu0 %v844_v19  ;;  %v862_v17 = vunpack.c.l.bf16 %v861_v13  ;;  %v863_v19 = vunpack.c.h.bf16 %v861_v13 }
  0x1b   : > { %v302_v37 = vrot.slane %v300_v31, 7  ;;  %v310_v38 = vrot.slane %v308_v33, 7 }
  0x1c   : > { %504 = vmatpush.bf16.msra.mxu1 %v835_v22 }
  0x1d   : > { %588 = vmatpush.bf16.msra.mxu2 %v851_v23  ;;  %v305_v44 = vor.u32 %v303_v32, %v302_v37  ;;  %v306_v45 = vrot.slane %v302_v37, 4  ;;  %v313_v46 = vor.u32 %v311_v34, %v310_v38  ;;  %v315_v47 = vrot.slane %v310_v38, 4 }
  0x1e   : > { %441 = vmatpush.bf16.msra.mxu0 %v843_v26 }
  0x1f   : > { %v314_v49 = vsel %vm1000_vm5, %v306_v45, %v313_v46  ;;  %v323_v50 = vsel %vm1006_vm6, %v305_v44, %v322_v40  ;;  %v329_v51 = vsel %vm327_vm7, %v315_v47, %v328_v41 }
  0x20   : > { %505 = vmatpush.bf16.msra.mxu1 %v834_v29  ;;  %324 = vst [vmem:[#allocation2] sm:$0xf] %v323_v50 }
  0x21   : > { %589 = vmatpush.bf16.msra.mxu2 %v850_v30  ;;  %325 = vst [vmem:[#allocation2 + $0x4] sm:$0xf] %v314_v49 }
  0x22   : > { %442 = vmatpush.bf16.msra.mxu0 %v842_v35  ;;  %330 = vst [vmem:[#allocation2 + $0x8] sm:$0x1] %v329_v51 }
  0x24   : > { %506 = vmatpush.bf16.msra.mxu1 %v833_v42 }
  0x25   : > { %590 = vmatpush.bf16.msra.mxu2 %v849_v43 }
  0x26   : > { %443 = vmatpush.bf16.msra.mxu0 %v841_v48 }
  0x28   : > { %507 = vmatpush.bf16.msra.mxu1 %v832_v52  ;;  %v831_v55 = vld [vmem:[#allocation2] sm:$0xff] }
  0x29   : > { %591 = vmatpush.bf16.msra.mxu2 %v848_v53  ;;  %v333_v56 = vld [vmem:[#allocation2 + $0x8] sm:$0x1]  ;;  %v377_v58 = vshrl.u32 %v831_v55, 16  ;;  %v379_v59 = vshll.u32 %v831_v55, 16  ;;  %v532_v61 = vrot.slane %v831_v55, 1 }
  0x2a   : > { %444 = vmatpush.bf16.msra.mxu0 %v840_v54  ;;  %v372_v57 = vunpack.c.l.b16 %v333_v56 }
  0x2b   : > { %508 = vmatmul.bf16.vlgmr.msra.gmra.mxu1 %v831_v55  ;;  %v381_v62 = vrot.slane %v379_v59, 1 }
  0x2c   : > { %v374_v60 = vpack.c.b16 %v372_v57, %v372_v57 }
  0x2d   : > { %v382_v0 = vor.u32 %v381_v62, %v377_v58 }
  0x2e   : > { %v533_v63 = vrot.slane %v374_v60, 1  ;;  %v384_v1 = vshll.u32 %v374_v60, 16 }
  0x30   : > { %v534_v2 = vsel %vm531_vm8, %v532_v61, %v533_v63  ;;  %v386_v3 = vrot.slane %v384_v1, 1 }
  0x31   : > { %592 = vmatmul.bf16.vlgmr.msra.gmra.mxu2 %v534_v2 }
  0x32   : > { %v387_v4 = vsel %vm375_vm9, %v382_v0, %v386_v3 }
  0x33   : > { %445 = vmatmul.bf16.vlgmr.msra.gmra.mxu0 %v387_v4 }
  0xa8   : > { %v509_v5 = vpop.f32.mrf.mxu1 }
  0xb0   : > { %v446_v6 = vpop.f32.mrf.mxu0  ;;  %v511_v12 = vpop.f32.mrf.mxu1 }
  0xb1   : > { %v510_v8 = vadd.f32 %v509_v5, %v446_v6 }
  0xb4   : > { %v593_v7 = vpop.f32.mrf.mxu2 }
  0xb5   : > { %v598_v10 = vadd.f32 %v593_v7, %v510_v8 }
  0xb7   : > { %v604_v16 = vadd.f32 %v880_v11, %v598_v10 }
  0xb8   : > { %v448_v9 = vpop.f32.mrf.mxu0 }
  0xb9   : > { %v512_v14 = vadd.f32 %v511_v12, %v448_v9  ;;  %v610_v21 = vadd.f32 %v862_v17, %v604_v16 }
  0xbc   : > { %v595_v15 = vpop.f32.mrf.mxu2 }
  0xbd   : > { %v599_v18 = vadd.f32 %v595_v15, %v512_v14 }
  0xbf   : > { %v605_v20 = vadd.f32 %v880_v11, %v599_v18 }
  0xc1   : > { %v611_v22 = vadd.f32 %v863_v19, %v605_v20 }
  0xc3   : > { %v867_v23 = vpack.c.bf16 %v611_v22, %v610_v21 }
  0xc5   : > { %868 = vst [vmem:[%s271_s18] sm:$0xff] %v867_v23  }
  0xc6 PF: > { %s16_s21 = sadd.s32 1, %s887_s21  }
  0xc7   : > { %p13_p4 = scmp.ge.s32.totalorder %s16_s21, 4  }
  0xc9   :  { %15 = sbr.rel (!%p13_p4) target bundleno = 1 (0x1), region = 79 }

// kernel: stresnet_forward.10
= control target key start
LH: loop header
LB: loop body
LE: loop exit
PB: predicated region body
PF: predicated region fallthrough
CT: control target
= control target key end

     0   :  { %s420_s12 = smov 0   ;;  %s464_s0 = inlined_call_operand.vmem [shape: bf16[2,16,128], index: 0, kind: input, shape index: {}]   ;;  %s465_s1 = inlined_call_operand.vmem [shape: bf16[1,128,128], index: 1, kind: input, shape index: {}]   ;;  %s466_s2 = inlined_call_operand.vmem [shape: f32[1,128], index: 2, kind: input, shape index: {}]   ;;  %s467_s3 = inlined_call_operand.vmem [shape: bf16[2,16,128], index: 3, kind: output, shape index: {}]  }
   0x1 LB: > { %s320_s13 = sadd.s32 4294967295, %s398_s12   ;;  %p324_p0 = scmp.ge.s32.totalorder %s398_s12, 1  ;;  %s398_s12 = sphi %s420_s12, %s13_s12  }
   0x2   : > { %p137_p1 = scmp.lt.s32.totalorder %s398_s12, 3 }
   0x4   : > { %p138_p2 = pnand %p324_p0, %p137_p1 }
   0x5   : > { %p161_p3 = scmp.lt.s32.totalorder (!%p138_p2), %s320_s13, 1 }
   0x6   : > { %141 = sbr.rel (%p138_p2) target bundleno = 182 (0xb6), region = 32 }
   0xb   : > { %v377_v0 = vld [vmem:[%s465_s1 + $0x38] sm:$0xff]  ;;  %v376_v1 = vld [vmem:[%s465_s1 + $0x30] sm:$0xff]  ;;  %v375_v2 = vld [vmem:[%s465_s1 + $0x28] sm:$0xff]  ;;  %s469_s13 = smov (!%p161_p3, %s320_s13), 1 }
   0xc   : > { %247 = vmatpush.bf16.msra.mxu0 %v377_v0  ;;  %v374_v3 = vld [vmem:[%s465_s1 + $0x20] sm:$0xff]  ;;  %v373_v4 = vld [vmem:[%s465_s1 + $0x18] sm:$0xff]  ;;  %v372_v5 = vld [vmem:[%s465_s1 + $0x10] sm:$0xff]  ;;  %s367_s28 = sshll.u32 %s469_s13, 3 }
   0xd   : > { %v371_v6 = vld [vmem:[%s465_s1 + $0x8] sm:$0xff]  ;;  %v370_v7 = vld [vmem:[%s465_s1] sm:$0xff]  ;;  %s165_s6 = scalar_lea.vmem %s464_s0, %s367_s28  ;;  %s170_s11 = scalar_lea.vmem %s467_s3, %s367_s28 }
   0xe   : > { %v369_v8 = vld [vmem:[%s165_s6] sm:$0xff] }
   0xf   : > { %v391_v10 = vld [vmem:[%s466_s2] ss:$0 sm:$0xff] }
  0x10   : > { %248 = vmatpush.bf16.msra.mxu0 %v376_v1 }
  0x14   : > { %249 = vmatpush.bf16.msra.mxu0 %v375_v2 }
  0x18   : > { %250 = vmatpush.bf16.msra.mxu0 %v374_v3 }
  0x1c   : > { %251 = vmatpush.bf16.msra.mxu0 %v373_v4 }
  0x20   : > { %252 = vmatpush.bf16.msra.mxu0 %v372_v5 }
  0x24   : > { %253 = vmatpush.bf16.msra.mxu0 %v371_v6 }
  0x28   : > { %254 = vmatpush.bf16.msra.mxu0 %v370_v7 }
  0x2b   : > { %255 = vmatmul.bf16.vlgmr.msra.gmra.mxu0 %v369_v8 }
  0xa8   : > { %v256_v9 = vpop.f32.mrf.mxu0 }
  0xa9   : > { %v257_v12 = vadd.f32 %v391_v10, %v256_v9 }
  0xb0   : > { %v258_v11 = vpop.f32.mrf.mxu0 }
  0xb1   : > { %v259_v13 = vadd.f32 %v391_v10, %v258_v11 }
  0xb3   : > { %v381_v14 = vpack.c.bf16 %v259_v13, %v257_v12 }
  0xb5   : > { %382 = vst [vmem:[%s170_s11] sm:$0xff] %v381_v14  }
  0xb6 PF: > { %s13_s12 = sadd.s32 1, %s398_s12  }
  0xb7   : > { %p10_p4 = scmp.ge.s32.totalorder %s13_s12, 4  }
  0xb9   :  { %12 = sbr.rel (!%p10_p4) target bundleno = 1 (0x1), region = 62 }

// kernel: stresnet_forward.13
= control target key start
LH: loop header
LB: loop body
LE: loop exit
PB: predicated region body
PF: predicated region fallthrough
CT: control target
= control target key end

     0   :  { %s497_s15 = smov 0   ;;  %s544_s0 = inlined_call_operand.vmem [shape: bf16[2,16,128], index: 0, kind: input, shape index: {}]   ;;  %s545_s1 = inlined_call_operand.vmem [shape: bf16[1,128,128], index: 1, kind: input, shape index: {}]   ;;  %s546_s2 = inlined_call_operand.vmem [shape: f32[1,128], index: 2, kind: input, shape index: {}]   ;;  %s547_s3 = inlined_call_operand.vmem [shape: bf16[2,16,128], index: 3, kind: input, shape index: {}]   ;;  %s548_s4 = inlined_call_operand.vmem [shape: bf16[2,16,128], index: 4, kind: output, shape index: {}]  }
   0x1 LB: > { %s385_s16 = sadd.s32 4294967295, %s470_s15   ;;  %p389_p0 = scmp.ge.s32.totalorder %s470_s15, 1  ;;  %s470_s15 = sphi %s497_s15, %s14_s15  }
   0x2   : > { %p172_p1 = scmp.lt.s32.totalorder %s470_s15, 3 }
   0x4   : > { %p173_p2 = pnand %p389_p0, %p172_p1 }
   0x5   : > { %p203_p3 = scmp.lt.s32.totalorder (!%p173_p2), %s385_s16, 1 }
   0x6   : > { %176 = sbr.rel (%p173_p2) target bundleno = 184 (0xb8), region = 36 }
   0xb   : > { %v445_v0 = vld [vmem:[%s545_s1 + $0x38] sm:$0xff]  ;;  %v444_v1 = vld [vmem:[%s545_s1 + $0x30] sm:$0xff]  ;;  %v443_v2 = vld [vmem:[%s545_s1 + $0x28] sm:$0xff]  ;;  %s550_s16 = smov (!%p203_p3, %s385_s16), 1 }
   0xc   : > { %294 = vmatpush.bf16.msra.mxu0 %v445_v0  ;;  %v442_v3 = vld [vmem:[%s545_s1 + $0x20] sm:$0xff]  ;;  %v441_v4 = vld [vmem:[%s545_s1 + $0x18] sm:$0xff]  ;;  %v440_v5 = vld [vmem:[%s545_s1 + $0x10] sm:$0xff]  ;;  %s434_s5 = sshll.u32 %s550_s16, 3 }
   0xd   : > { %v439_v6 = vld [vmem:[%s545_s1 + $0x8] sm:$0xff]  ;;  %v438_v7 = vld [vmem:[%s545_s1] sm:$0xff]  ;;  %s207_s10 = scalar_lea.vmem %s544_s0, %s434_s5  ;;  %s212_s13 = scalar_lea.vmem %s547_s3, %s434_s5 }
   0xe   : > { %v437_v8 = vld [vmem:[%s207_s10] sm:$0xff]  ;;  %s217_s19 = scalar_lea.vmem %s548_s4, %s434_s5 }
   0xf   : > { %v463_v10 = vld [vmem:[%s546_s2] ss:$0 sm:$0xff] }
  0x10   : > { %295 = vmatpush.bf16.msra.mxu0 %v444_v1  ;;  %v447_v11 = vld [vmem:[%s212_s13] sm:$0xff]  }
  0x11   : > { %v448_v13 = vunpack.c.l.bf16 %v447_v11  ;;  %v449_v14 = vunpack.c.h.bf16 %v447_v11 }
  0x14   : > { %296 = vmatpush.bf16.msra.mxu0 %v443_v2 }
  0x18   : > { %297 = vmatpush.bf16.msra.mxu0 %v442_v3 }
  0x1c   : > { %298 = vmatpush.bf16.msra.mxu0 %v441_v4 }
  0x20   : > { %299 = vmatpush.bf16.msra.mxu0 %v440_v5 }
  0x24   : > { %300 = vmatpush.bf16.msra.mxu0 %v439_v6 }
  0x28   : > { %301 = vmatpush.bf16.msra.mxu0 %v438_v7 }
  0x2b   : > { %302 = vmatmul.bf16.vlgmr.msra.gmra.mxu0 %v437_v8 }
  0xa8   : > { %v303_v9 = vpop.f32.mrf.mxu0 }
  0xa9   : > { %v304_v12 = vadd.f32 %v463_v10, %v303_v9 }
  0xab   : > { %v312_v17 = vadd.f32 %v448_v13, %v304_v12 }
  0xb0   : > { %v305_v15 = vpop.f32.mrf.mxu0 }
  0xb1   : > { %v306_v16 = vadd.f32 %v463_v10, %v305_v15 }
  0xb3   : > { %v313_v18 = vadd.f32 %v449_v14, %v306_v16 }
  0xb5   : > { %v453_v19 = vpack.c.bf16 %v313_v18, %v312_v17 }
  0xb7   : > { %454 = vst [vmem:[%s217_s19] sm:$0xff] %v453_v19  }
  0xb8 PF: > { %s14_s15 = sadd.s32 1, %s470_s15  }
  0xb9   : > { %p11_p4 = scmp.ge.s32.totalorder %s14_s15, 4  }
  0xbb   :  { %13 = sbr.rel (!%p11_p4) target bundleno = 1 (0x1), region = 69 }

// kernel: stresnet_forward.17
= control target key start
LH: loop header
LB: loop body
LE: loop exit
PB: predicated region body
PF: predicated region fallthrough
CT: control target
= control target key end

     0   :  { %s489_s18 = smov 0   ;;  %s543_s0 = inlined_call_operand.vmem [shape: bf16[2,16,128], index: 0, kind: input, shape index: {}]   ;;  %s544_s1 = inlined_call_operand.vmem [shape: f32[1,128], index: 1, kind: input, shape index: {}]   ;;  %s545_s2 = inlined_call_operand.vmem [shape: f32[1,128], index: 2, kind: input, shape index: {}]   ;;  %s546_s3 = inlined_call_operand.vmem [shape: bf16[1,128,128], index: 3, kind: input, shape index: {}]   ;;  %s547_s4 = inlined_call_operand.vmem [shape: f32[1,128], index: 4, kind: input, shape index: {}]   ;;  %s548_s5 = inlined_call_operand.vmem [shape: f32[2,16,128], index: 5, kind: output, shape index: {}]  }
   0x1 LB: > { %s383_s19 = sadd.s32 4294967295, %s457_s18   ;;  %p387_p0 = scmp.ge.s32.totalorder %s457_s18, 1  ;;  %s457_s18 = sphi %s489_s18, %s15_s18  }
   0x2   : > { %p187_p1 = scmp.lt.s32.totalorder %s457_s18, 3 }
   0x4   : > { %p188_p2 = pnand %p387_p0, %p187_p1 }
   0x5   : > { %p215_p3 = scmp.lt.s32.totalorder (!%p188_p2), %s383_s19, 1 }
   0x6   : > { %191 = sbr.rel (%p188_p2) target bundleno = 180 (0xb4), region = 40 }
   0xb   : > { %v435_v0 = vld [vmem:[%s546_s3 + $0x38] sm:$0xff]  ;;  %v434_v1 = vld [vmem:[%s546_s3 + $0x30] sm:$0xff]  ;;  %s550_s19 = smov (!%p215_p3, %s383_s19), 1  ;;  %v433_v2 = vld [vmem:[%s546_s3 + $0x28] sm:$0xff] }
   0xc   : > { %312 = vmatpush.bf16.msra.mxu0 %v435_v0  ;;  %s426_s24 = sshll.u32 %s550_s19, 3  ;;  %v432_v3 = vld [vmem:[%s546_s3 + $0x20] sm:$0xff]  ;;  %v431_v8 = vld [vmem:[%s546_s3 + $0x18] sm:$0xff]  ;;  %v430_v12 = vld [vmem:[%s546_s3 + $0x10] sm:$0xff]  ;;  %s427_s21 = sshll.u32 %s550_s19, 4 }
   0xd   : > { %s219_s29 = scalar_lea.vmem %s543_s0, %s426_s24  ;;  %v448_v7 = vld [vmem:[%s544_s1] ss:$0 sm:$0xff]  ;;  %v429_v15 = vld [vmem:[%s546_s3 + $0x8] sm:$0xff]  ;;  %s224_s26 = scalar_lea.vmem %s548_s5, %s427_s21 }
   0xe   : > { %v437_v4 = vld [vmem:[%s219_s29] sm:$0xff]  }
   0xf   : > { %v438_v5 = vunpack.c.l.bf16 %v437_v4  ;;  %v439_v6 = vunpack.c.h.bf16 %v437_v4  ;;  %v449_v11 = vld [vmem:[%s545_s2] ss:$0 sm:$0xff] }
  0x10   : > { %313 = vmatpush.bf16.msra.mxu0 %v434_v1  ;;  %v428_v18 = vld [vmem:[%s546_s3] sm:$0xff] }
  0x11   : > { %v233_v9 = vmul.f32 %v448_v7, %v438_v5  ;;  %v234_v10 = vmul.f32 %v448_v7, %v439_v6  ;;  %v450_v20 = vld [vmem:[%s547_s4] ss:$0 sm:$0xff] }
  0x13   : > { %v239_v13 = vadd.f32 %v449_v11, %v233_v9  ;;  %v240_v14 = vadd.f32 %v449_v11, %v234_v10 }
  0x14   : > { %314 = vmatpush.bf16.msra.mxu0 %v433_v2 }
  0x15   : > { %v241_v16 = vmax.f32 %v239_v13, 0.0  ;;  %v242_v17 = vmax.f32 %v240_v14, 0.0 }
  0x17   : > { %v243_v19 = vpack.c.bf16 %v242_v17, %v241_v16 }
  0x18   : > { %315 = vmatpush.bf16.msra.mxu0 %v432_v3 }
  0x1c   : > { %316 = vmatpush.bf16.msra.mxu0 %v431_v8 }
  0x20   : > { %317 = vmatpush.bf16.msra.mxu0 %v430_v12 }
  0x24   : > { %318 = vmatpush.bf16.msra.mxu0 %v429_v15 }
  0x28   : > { %319 = vmatpush.bf16.msra.mxu0 %v428_v18 }
  0x2b   : > { %320 = vmatmul.bf16.vlgmr.msra.gmra.mxu0 %v243_v19 }
  0xa8   : > { %v321_v21 = vpop.f32.mrf.mxu0 }
  0xa9   : > { %v322_v22 = vadd.f32 %v450_v20, %v321_v21 }
  0xab   : > { %326 = vst [vmem:[%s224_s26] sm:$0xff] %v322_v22 }
  0xb0   : > { %v323_v23 = vpop.f32.mrf.mxu0 }
  0xb1   : > { %v324_v24 = vadd.f32 %v450_v20, %v323_v23 }
  0xb3   : > { %327 = vst [vmem:[%s224_s26 + $0x8] sm:$0xff] %v324_v24 }
  0xb4 PF: > { %s15_s18 = sadd.s32 1, %s457_s18  }
  0xb5   : > { %p12_p4 = scmp.ge.s32.totalorder %s15_s18, 4  }
  0xb7   :  { %14 = sbr.rel (!%p12_p4) target bundleno = 1 (0x1), region = 70 }

</bundles_post_ra>
